<compile_context>
chip_gen: v6e
topology: v6e:2x2x1
jax: 0.10.0
libtpu: 0.0.40
codegen_flags: <defaults>
</compile_context>

<pallas_src>
import functools

import numpy as np
import jax
import jax.numpy as jnp
from jax.experimental import pallas as pl
from jax.experimental.pallas import tpu as pltpu


def _round_up(x, m):
    return (x + m - 1) // m * m


# ---------------------------------------------------------------------------
# Parameter preprocessing (runs once, off the forward hot path).
# ---------------------------------------------------------------------------
def _dense_conv_matrix(w_oihw, in_chw, stride, pad):
    """Dense matrix T such that  flat_out = flat_in @ T  for a bias-free
    Conv2d(stride, pad) on CHW-flattened activations (host-side numpy)."""
    w = np.asarray(jax.device_get(w_oihw), dtype=np.float32)
    c_out, c_in, k_h, k_w = w.shape
    c, h_in, w_in = in_chw
    assert c == c_in
    h_out = (h_in + 2 * pad - k_h) // stride + 1
    w_out = (w_in + 2 * pad - k_w) // stride + 1
    t = np.zeros((c_in * h_in * w_in, c_out * h_out * w_out), np.float32)
    ci_idx = np.arange(c_in)
    for co in range(c_out):
        for ho in range(h_out):
            for wo in range(w_out):
                col = (co * h_out + ho) * w_out + wo
                for kh in range(k_h):
                    h = ho * stride + kh - pad
                    if h < 0 or h >= h_in:
                        continue
                    for kw in range(k_w):
                        wp = wo * stride + kw - pad
                        if wp < 0 or wp >= w_in:
                            continue
                        rows = (ci_idx * h_in + h) * w_in + wp
                        t[rows, col] = w[co, :, kh, kw]
    return t, (c_out, h_out, w_out)


def init_params(key, nc, nf):
    """Deterministic synthetic weights with the module's shapes (bias=False)."""
    k1, k2, k3 = jax.random.split(key, 3)
    w1 = 0.05 * jax.random.normal(k1, (nf, nc, 2, 2), jnp.float32)
    w2 = 0.05 * jax.random.normal(k2, (2 * nf, nf, 4, 4), jnp.float32)
    w3 = 0.05 * jax.random.normal(k3, (1, 2 * nf, 4, 4), jnp.float32)
    return (w1, w2, w3)


def prepare_params(params, nc, in_hw):
    """One-time lowering of the three convs (hoisted off the forward path):
       * conv1 (k=2,s=2,p=1) -> (nc*4, nf) scalar table for SMEM (384 B of
         real weights; the old dense 768x768 T1 was ~2.25 MiB).
       * conv2 -> per-conv1-channel dense slabs (nf, P1p, n2p), bf16.
       * conv3 -> dense (n2p, n3p), bf16, lane-padded output dim.
    """
    w1, w2, w3 = params
    h_in, w_in = in_hw
    nf = int(w1.shape[0])
    assert int(w1.shape[1]) == nc and tuple(w1.shape[2:]) == (2, 2)

    h1 = (h_in + 2 - 2) // 2 + 1
    w1s = (w_in + 2 - 2) // 2 + 1
    p1 = h1 * w1s
    n_feat = nc * 4

    # conv1 scalar table, feature index f = ci*4 + kh*2 + kw.
    w1_np = np.asarray(jax.device_get(w1), np.float32)          # (nf, nc, 2, 2)
    w1mat = np.transpose(w1_np, (1, 2, 3, 0)).reshape(n_feat, nf)

    # conv2 / conv3 as dense matrices on CHW-flattened activations.
    t2, s2 = _dense_conv_matrix(w2, (nf, h1, w1s), stride=2, pad=1)
    t3, s3 = _dense_conv_matrix(w3, s2, stride=2, pad=1)

    p1p = _round_up(p1, 128)
    n2, n3 = t2.shape[1], t3.shape[1]
    n2p = _round_up(n2, 128)
    n3p = _round_up(n3, 128)

    # conv2 split per conv1-output-channel: t2s[co] acts on the channel-co
    # slab (spatial positions in lanes) produced inside the kernel.
    t2s = np.zeros((nf, p1p, n2p), np.float32)
    for co in range(nf):
        t2s[co, :p1, :n2] = t2[co * p1:(co + 1) * p1, :]
    t3p = np.zeros((n2p, n3p), np.float32)
    t3p[:n2, :n3] = t3

    prepared = (jnp.asarray(w1mat, jnp.float32),    # SMEM scalar table (f32)
                jnp.asarray(t2s, jnp.bfloat16),     # bf16: half the weight DMA,
                jnp.asarray(t3p, jnp.bfloat16))     # native MXU input format
    meta = dict(out_chw=s3, out_flat=n3, P1=p1)
    return prepared, meta


# ---------------------------------------------------------------------------
# Fused kernel: conv1 -> LReLU -> conv2 -> LReLU -> conv3 [-> sigmoid]
# ---------------------------------------------------------------------------
def _fused_disc_kernel(w1_ref, x_ref, t2_ref, t3_ref, o_ref, *,
                       nf, n_feat, slope, apply_sigmoid):
    tile_m = o_ref.shape[0]
    n2p = t2_ref.shape[2]
    h2 = jnp.zeros((tile_m, n2p), jnp.float32)
    for co in range(nf):
        # conv1 output channel `co` over all spatial positions (lanes):
        # n_feat scalar-FMAs on the VPU, weights read from SMEM (f32).
        h1 = w1_ref[0, co] * x_ref[0]
        for f in range(1, n_feat):
            h1 = h1 + w1_ref[f, co] * x_ref[f]
        h1 = jnp.maximum(h1, slope * h1)                 # LeakyReLU(0.2), f32
        # conv2 contribution of channel `co`: MXU, bf16 x bf16 -> f32 acc.
        h2 = h2 + jnp.dot(h1.astype(jnp.bfloat16), t2_ref[co],
                          preferred_element_type=jnp.float32)
    h2 = jnp.maximum(h2, slope * h2)                     # LeakyReLU(0.2), f32
    h3 = jnp.dot(h2.astype(jnp.bfloat16), t3_ref[...],
                 preferred_element_type=jnp.float32)
    if apply_sigmoid:
        # sigmoid = 1/(1+exp(-x)); exp and approx reciprocal both land on EUP.
        h3 = pl.reciprocal(1.0 + jnp.exp(-h3), approx=True)
    o_ref[...] = h3.astype(o_ref.dtype)


def _im2col_k2s2p1(x):
    """conv1 (k=2, s=2, p=1) im2col:  (N,C,H,W) -> (C*4, N, P1) with feature
    index f = ci*4 + kh*2 + kw and spatial index p = ho*w1 + wo.  Pure data
    layout prep (a few KiB per sample), hoisted into the XLA wrapper."""
    n, c, h, w = x.shape
    h1, w1 = h // 2 + 1, w // 2 + 1
    xp = jnp.pad(x, ((0, 0), (0, 0), (1, 1), (1, 1)))
    cols = [xp[:, :, kh::2, kw::2][:, :, :h1, :w1]
            for kh in (0, 1) for kw in (0, 1)]           # each (N, C, h1, w1)
    feats = jnp.stack(cols, axis=2)                      # (N, C, 4, h1, w1)
    feats = feats.reshape(n, c * 4, h1 * w1)             # (N, F, P1)
    return jnp.transpose(feats, (1, 0, 2))               # (F, N, P1)


def disc_ecal_forward(x_nchw, prepared, meta, *, is_gan=True, max_tile_m=128):
    """DiscEcal.forward:
       Conv(nc->nf,  k=2, s=2, p=1) -> LeakyReLU(0.2)
       Conv(nf->2nf, k=4, s=2, p=1) -> LeakyReLU(0.2)
       Conv(2nf->1,  k=4, s=2, p=1) -> [sigmoid iff type == GAN]
    """
    # TODO(synk): mygan.GANS enum is unavailable; the `type == GANS.GAN`
    # branch is modeled by the static boolean `is_gan` (True -> sigmoid).
    w1mat, t2s, t3p = prepared
    n = x_nchw.shape[0]
    n_feat, nf = w1mat.shape
    _, p1p, n2p = t2s.shape
    n3p = t3p.shape[1]
    p1 = meta["P1"]

    feats = _im2col_k2s2p1(x_nchw.astype(jnp.float32))   # (F, N, P1)
    assert feats.shape[0] == n_feat and feats.shape[2] == p1

    # 8-aligned tile_m that near-divides the padded batch (minimal padded-M
    # waste); split into >1 grid step (both v7x TCs via "parallel") only once
    # the batch is large enough for compute to matter.
    m8 = _round_up(max(n, 8), 8)
    num_tiles = max(1, -(-m8 // max_tile_m))
    tile_m = _round_up(-(-m8 // num_tiles), 8)
    mp = tile_m * num_tiles

    pad_m, pad_p = mp - n, p1p - p1
    if pad_m or pad_p:                      # skip zero-width wrapper pads
        feats = jnp.pad(feats, ((0, 0), (0, pad_m), (0, pad_p)))

    kern = functools.partial(_fused_disc_kernel, nf=nf, n_feat=n_feat,
                             slope=0.2, apply_sigmoid=is_gan)
    flops = 2 * mp * (n_feat * nf * p1p + nf * p1p * n2p + n2p * n3p)
    bytes_acc = (4 * n_feat * (mp * p1p + nf) + 2 * nf * p1p * n2p
                 + 2 * n2p * n3p + 4 * mp * n3p)

    out = pl.pallas_call(
        kern,
        out_shape=jax.ShapeDtypeStruct((mp, n3p), jnp.float32),
        grid=(num_tiles,),
        in_specs=[
            # conv1 weights: (n_feat, nf) scalars, read from SMEM in-kernel.
            pl.BlockSpec(memory_space=pltpu.MemorySpace.SMEM),
            # im2col'd activations: spatial positions in the lane dim.
            pl.BlockSpec((n_feat, tile_m, p1p), lambda i: (0, i, 0)),
            # conv2 per-channel dense slabs, bf16; constant index_map so the
            # block is not re-fetched across grid steps.
            pl.BlockSpec((nf, p1p, n2p), lambda i: (0, 0, 0)),
            # conv3 dense matrix, bf16, lane-dense (padded to 128) output dim.
            pl.BlockSpec((n2p, n3p), lambda i: (0, 0)),
        ],
        out_specs=pl.BlockSpec((tile_m, n3p), lambda i: (i, 0)),
        compiler_params=pltpu.CompilerParams(
            dimension_semantics=("parallel",),
            vmem_limit_bytes=32 * 1024 * 1024,
        ),
        cost_estimate=pl.CostEstimate(
            flops=flops,
            transcendentals=(2 * mp * n3p) if is_gan else 0,
            bytes_accessed=bytes_acc,
        ),
    )(w1mat, feats, t2s, t3p)

    c3, h3, w3 = meta["out_chw"]
    return out[:n, : meta["out_flat"]].reshape(n, c3, h3, w3)


# ---------------------------------------------------------------------------
# Pure-JAX (lax.conv, f32) reference for correctness checking.
# ---------------------------------------------------------------------------
def _reference_forward(x_nchw, params, *, is_gan=True):
    w1, w2, w3 = params
    dn = ("NCHW", "OIHW", "NCHW")
    y = jax.lax.conv_general_dilated(x_nchw, w1, (2, 2), [(1, 1), (1, 1)],
                                     dimension_numbers=dn)
    y = jnp.where(y >= 0, y, 0.2 * y)
    y = jax.lax.conv_general_dilated(y, w2, (2, 2), [(1, 1), (1, 1)],
                                     dimension_numbers=dn)
    y = jnp.where(y >= 0, y, 0.2 * y)
    y = jax.lax.conv_general_dilated(y, w3, (2, 2), [(1, 1), (1, 1)],
                                     dimension_numbers=dn)
    if is_gan:
        y = 1.0 / (1.0 + jnp.exp(-y))
    return y


if __name__ == "__main__":
    key = jax.random.PRNGKey(0)
    kx, kp = jax.random.split(key)

    # Small shapes implied by the module: problem.nc=3, problem.nf=8, 16x16.
    N, nc, nf, H, W = 2, 3, 8, 16, 16
    x = jax.random.normal(kx, (N, nc, H, W), jnp.float32)
    params = init_params(kp, nc, nf)

    # One-time weight preprocessing (off the forward hot path).
    prepared, meta = prepare_params(params, nc, (H, W))

    # meta / is_gan are Python constants: bind them via partial so they stay
    # static under jit (fixes the "Slice entries must be static" crash).
    fwd = jax.jit(functools.partial(disc_ecal_forward, meta=meta, is_gan=True))
    out = jax.block_until_ready(fwd(x, prepared))
    ref = jax.block_until_ready(_reference_forward(x, params, is_gan=True))

    assert out.shape == (N, 1, 2, 2), out.shape
    err = float(jnp.max(jnp.abs(out - ref)))
    # Tolerance accounts for bf16 weights/activations at the dots plus the
    # approx-reciprocal sigmoid (expected error well below 1e-2 absolute).
    assert err < 1e-2, f"max abs err = {err}"
    print("KERNEL_OK")
</pallas_src>

<mosaic_0001>
module attributes {stable_mosaic.version = 11 : i64} {
  func.func @_fused_disc_kernel(%arg0: i32, %arg1: memref<12x8xf32, #tpu.memory_space<smem>>, %arg2: memref<12x8x128xf32, #tpu.memory_space<vmem>>, %arg3: memref<8x128x256xbf16, #tpu.memory_space<vmem>>, %arg4: memref<256x128xbf16, #tpu.memory_space<vmem>>, %arg5: memref<8x128xf32, #tpu.memory_space<vmem>>) attributes {dimension_semantics = [#tpu.dimension_semantics<parallel>], iteration_bounds = array<i64: 1>, scalar_prefetch = 0 : i64, scratch_operands = 0 : i64, tpu.core_type = #tpu.core_type<tc>, window_params = [{transform_indices = @transform_0, window_bounds = array<i64: 12, 8>}, {transform_indices = @transform_1, window_bounds = array<i64: 12, 8, 128>}, {pipeline_mode = #tpu.pipeline_mode<synchronous>, transform_indices = @transform_2, window_bounds = array<i64: 8, 128, 256>}, {pipeline_mode = #tpu.pipeline_mode<synchronous>, transform_indices = @transform_3, window_bounds = array<i64: 256, 128>}, {transform_indices = @transform_4, window_bounds = array<i64: 8, 128>}]} {
    %cst = arith.constant 0.000000e+00 : f32
    %0 = vector.broadcast %cst : f32 to vector<8x256xf32>
    %c0 = arith.constant 0 : index
    %c0_0 = arith.constant 0 : index
    %1 = memref.load %arg1[%c0, %c0_0] : memref<12x8xf32, #tpu.memory_space<smem>>
    %c0_1 = arith.constant 0 : index
    %c0_2 = arith.constant 0 : index
    %c0_3 = arith.constant 0 : index
    %2 = vector.load %arg2[%c0_1, %c0_2, %c0_3] : memref<12x8x128xf32, #tpu.memory_space<vmem>>, vector<1x8x128xf32>
    %3 = vector.shape_cast %2 : vector<1x8x128xf32> to vector<8x128xf32>
    %4 = vector.broadcast %1 : f32 to vector<8x128xf32>
    %5 = arith.mulf %4, %3 : vector<8x128xf32>
    %c1 = arith.constant 1 : index
    %c0_4 = arith.constant 0 : index
    %6 = memref.load %arg1[%c1, %c0_4] : memref<12x8xf32, #tpu.memory_space<smem>>
    %c1_5 = arith.constant 1 : index
    %c0_6 = arith.constant 0 : index
    %c0_7 = arith.constant 0 : index
    %7 = vector.load %arg2[%c1_5, %c0_6, %c0_7] : memref<12x8x128xf32, #tpu.memory_space<vmem>>, vector<1x8x128xf32>
    %8 = vector.shape_cast %7 : vector<1x8x128xf32> to vector<8x128xf32>
    %9 = vector.broadcast %6 : f32 to vector<8x128xf32>
    %10 = arith.mulf %9, %8 : vector<8x128xf32>
    %11 = arith.addf %5, %10 : vector<8x128xf32>
    %c2 = arith.constant 2 : index
    %c0_8 = arith.constant 0 : index
    %12 = memref.load %arg1[%c2, %c0_8] : memref<12x8xf32, #tpu.memory_space<smem>>
    %c2_9 = arith.constant 2 : index
    %c0_10 = arith.constant 0 : index
    %c0_11 = arith.constant 0 : index
    %13 = vector.load %arg2[%c2_9, %c0_10, %c0_11] : memref<12x8x128xf32, #tpu.memory_space<vmem>>, vector<1x8x128xf32>
    %14 = vector.shape_cast %13 : vector<1x8x128xf32> to vector<8x128xf32>
    %15 = vector.broadcast %12 : f32 to vector<8x128xf32>
    %16 = arith.mulf %15, %14 : vector<8x128xf32>
    %17 = arith.addf %11, %16 : vector<8x128xf32>
    %c3 = arith.constant 3 : index
    %c0_12 = arith.constant 0 : index
    %18 = memref.load %arg1[%c3, %c0_12] : memref<12x8xf32, #tpu.memory_space<smem>>
    %c3_13 = arith.constant 3 : index
    %c0_14 = arith.constant 0 : index
    %c0_15 = arith.constant 0 : index
    %19 = vector.load %arg2[%c3_13, %c0_14, %c0_15] : memref<12x8x128xf32, #tpu.memory_space<vmem>>, vector<1x8x128xf32>
    %20 = vector.shape_cast %19 : vector<1x8x128xf32> to vector<8x128xf32>
    %21 = vector.broadcast %18 : f32 to vector<8x128xf32>
    %22 = arith.mulf %21, %20 : vector<8x128xf32>
    %23 = arith.addf %17, %22 : vector<8x128xf32>
    %c4 = arith.constant 4 : index
    %c0_16 = arith.constant 0 : index
    %24 = memref.load %arg1[%c4, %c0_16] : memref<12x8xf32, #tpu.memory_space<smem>>
    %c4_17 = arith.constant 4 : index
    %c0_18 = arith.constant 0 : index
    %c0_19 = arith.constant 0 : index
    %25 = vector.load %arg2[%c4_17, %c0_18, %c0_19] : memref<12x8x128xf32, #tpu.memory_space<vmem>>, vector<1x8x128xf32>
    %26 = vector.shape_cast %25 : vector<1x8x128xf32> to vector<8x128xf32>
    %27 = vector.broadcast %24 : f32 to vector<8x128xf32>
    %28 = arith.mulf %27, %26 : vector<8x128xf32>
    %29 = arith.addf %23, %28 : vector<8x128xf32>
    %c5 = arith.constant 5 : index
    %c0_20 = arith.constant 0 : index
    %30 = memref.load %arg1[%c5, %c0_20] : memref<12x8xf32, #tpu.memory_space<smem>>
    %c5_21 = arith.constant 5 : index
    %c0_22 = arith.constant 0 : index
    %c0_23 = arith.constant 0 : index
    %31 = vector.load %arg2[%c5_21, %c0_22, %c0_23] : memref<12x8x128xf32, #tpu.memory_space<vmem>>, vector<1x8x128xf32>
    %32 = vector.shape_cast %31 : vector<1x8x128xf32> to vector<8x128xf32>
    %33 = vector.broadcast %30 : f32 to vector<8x128xf32>
    %34 = arith.mulf %33, %32 : vector<8x128xf32>
    %35 = arith.addf %29, %34 : vector<8x128xf32>
    %c6 = arith.constant 6 : index
    %c0_24 = arith.constant 0 : index
    %36 = memref.load %arg1[%c6, %c0_24] : memref<12x8xf32, #tpu.memory_space<smem>>
    %c6_25 = arith.constant 6 : index
    %c0_26 = arith.constant 0 : index
    %c0_27 = arith.constant 0 : index
    %37 = vector.load %arg2[%c6_25, %c0_26, %c0_27] : memref<12x8x128xf32, #tpu.memory_space<vmem>>, vector<1x8x128xf32>
    %38 = vector.shape_cast %37 : vector<1x8x128xf32> to vector<8x128xf32>
    %39 = vector.broadcast %36 : f32 to vector<8x128xf32>
    %40 = arith.mulf %39, %38 : vector<8x128xf32>
    %41 = arith.addf %35, %40 : vector<8x128xf32>
    %c7 = arith.constant 7 : index
    %c0_28 = arith.constant 0 : index
    %42 = memref.load %arg1[%c7, %c0_28] : memref<12x8xf32, #tpu.memory_space<smem>>
    %c7_29 = arith.constant 7 : index
    %c0_30 = arith.constant 0 : index
    %c0_31 = arith.constant 0 : index
    %43 = vector.load %arg2[%c7_29, %c0_30, %c0_31] : memref<12x8x128xf32, #tpu.memory_space<vmem>>, vector<1x8x128xf32>
    %44 = vector.shape_cast %43 : vector<1x8x128xf32> to vector<8x128xf32>
    %45 = vector.broadcast %42 : f32 to vector<8x128xf32>
    %46 = arith.mulf %45, %44 : vector<8x128xf32>
    %47 = arith.addf %41, %46 : vector<8x128xf32>
    %c8 = arith.constant 8 : index
    %c0_32 = arith.constant 0 : index
    %48 = memref.load %arg1[%c8, %c0_32] : memref<12x8xf32, #tpu.memory_space<smem>>
    %c8_33 = arith.constant 8 : index
    %c0_34 = arith.constant 0 : index
    %c0_35 = arith.constant 0 : index
    %49 = vector.load %arg2[%c8_33, %c0_34, %c0_35] : memref<12x8x128xf32, #tpu.memory_space<vmem>>, vector<1x8x128xf32>
    %50 = vector.shape_cast %49 : vector<1x8x128xf32> to vector<8x128xf32>
    %51 = vector.broadcast %48 : f32 to vector<8x128xf32>
    %52 = arith.mulf %51, %50 : vector<8x128xf32>
    %53 = arith.addf %47, %52 : vector<8x128xf32>
    %c9 = arith.constant 9 : index
    %c0_36 = arith.constant 0 : index
    %54 = memref.load %arg1[%c9, %c0_36] : memref<12x8xf32, #tpu.memory_space<smem>>
    %c9_37 = arith.constant 9 : index
    %c0_38 = arith.constant 0 : index
    %c0_39 = arith.constant 0 : index
    %55 = vector.load %arg2[%c9_37, %c0_38, %c0_39] : memref<12x8x128xf32, #tpu.memory_space<vmem>>, vector<1x8x128xf32>
    %56 = vector.shape_cast %55 : vector<1x8x128xf32> to vector<8x128xf32>
    %57 = vector.broadcast %54 : f32 to vector<8x128xf32>
    %58 = arith.mulf %57, %56 : vector<8x128xf32>
    %59 = arith.addf %53, %58 : vector<8x128xf32>
    %c10 = arith.constant 10 : index
    %c0_40 = arith.constant 0 : index
    %60 = memref.load %arg1[%c10, %c0_40] : memref<12x8xf32, #tpu.memory_space<smem>>
    %c10_41 = arith.constant 10 : index
    %c0_42 = arith.constant 0 : index
    %c0_43 = arith.constant 0 : index
    %61 = vector.load %arg2[%c10_41, %c0_42, %c0_43] : memref<12x8x128xf32, #tpu.memory_space<vmem>>, vector<1x8x128xf32>
    %62 = vector.shape_cast %61 : vector<1x8x128xf32> to vector<8x128xf32>
    %63 = vector.broadcast %60 : f32 to vector<8x128xf32>
    %64 = arith.mulf %63, %62 : vector<8x128xf32>
    %65 = arith.addf %59, %64 : vector<8x128xf32>
    %c11 = arith.constant 11 : index
    %c0_44 = arith.constant 0 : index
    %66 = memref.load %arg1[%c11, %c0_44] : memref<12x8xf32, #tpu.memory_space<smem>>
    %c11_45 = arith.constant 11 : index
    %c0_46 = arith.constant 0 : index
    %c0_47 = arith.constant 0 : index
    %67 = vector.load %arg2[%c11_45, %c0_46, %c0_47] : memref<12x8x128xf32, #tpu.memory_space<vmem>>, vector<1x8x128xf32>
    %68 = vector.shape_cast %67 : vector<1x8x128xf32> to vector<8x128xf32>
    %69 = vector.broadcast %66 : f32 to vector<8x128xf32>
    %70 = arith.mulf %69, %68 : vector<8x128xf32>
    %71 = arith.addf %65, %70 : vector<8x128xf32>
    %cst_48 = arith.constant 2.000000e-01 : f32
    %72 = vector.broadcast %cst_48 : f32 to vector<8x128xf32>
    %73 = arith.mulf %72, %71 : vector<8x128xf32>
    %74 = arith.maximumf %71, %73 : vector<8x128xf32>
    %75 = arith.truncf %74 : vector<8x128xf32> to vector<8x128xbf16>
    %c0_49 = arith.constant 0 : index
    %c0_50 = arith.constant 0 : index
    %c0_51 = arith.constant 0 : index
    %76 = vector.load %arg3[%c0_49, %c0_50, %c0_51] : memref<8x128x256xbf16, #tpu.memory_space<vmem>>, vector<1x128x256xbf16>
    %77 = vector.shape_cast %76 : vector<1x128x256xbf16> to vector<128x256xbf16>
    %cst_52 = arith.constant dense<0.000000e+00> : vector<8x256xf32>
    %78 = tpu.matmul %75, %77, %cst_52 {dimension_numbers = #tpu.dot_dimension_numbers<[1], [0], [0], [1], [0, 0, 1, 1], [], []>} : vector<8x128xbf16>, vector<128x256xbf16>, vector<8x256xf32> -> vector<8x256xf32>
    %79 = arith.addf %0, %78 : vector<8x256xf32>
    %c0_53 = arith.constant 0 : index
    %c1_54 = arith.constant 1 : index
    %80 = memref.load %arg1[%c0_53, %c1_54] : memref<12x8xf32, #tpu.memory_space<smem>>
    %c0_55 = arith.constant 0 : index
    %c0_56 = arith.constant 0 : index
    %c0_57 = arith.constant 0 : index
    %81 = vector.load %arg2[%c0_55, %c0_56, %c0_57] : memref<12x8x128xf32, #tpu.memory_space<vmem>>, vector<1x8x128xf32>
    %82 = vector.shape_cast %81 : vector<1x8x128xf32> to vector<8x128xf32>
    %83 = vector.broadcast %80 : f32 to vector<8x128xf32>
    %84 = arith.mulf %83, %82 : vector<8x128xf32>
    %c1_58 = arith.constant 1 : index
    %c1_59 = arith.constant 1 : index
    %85 = memref.load %arg1[%c1_58, %c1_59] : memref<12x8xf32, #tpu.memory_space<smem>>
    %c1_60 = arith.constant 1 : index
    %c0_61 = arith.constant 0 : index
    %c0_62 = arith.constant 0 : index
    %86 = vector.load %arg2[%c1_60, %c0_61, %c0_62] : memref<12x8x128xf32, #tpu.memory_space<vmem>>, vector<1x8x128xf32>
    %87 = vector.shape_cast %86 : vector<1x8x128xf32> to vector<8x128xf32>
    %88 = vector.broadcast %85 : f32 to vector<8x128xf32>
    %89 = arith.mulf %88, %87 : vector<8x128xf32>
    %90 = arith.addf %84, %89 : vector<8x128xf32>
    %c2_63 = arith.constant 2 : index
    %c1_64 = arith.constant 1 : index
    %91 = memref.load %arg1[%c2_63, %c1_64] : memref<12x8xf32, #tpu.memory_space<smem>>
    %c2_65 = arith.constant 2 : index
    %c0_66 = arith.constant 0 : index
    %c0_67 = arith.constant 0 : index
    %92 = vector.load %arg2[%c2_65, %c0_66, %c0_67] : memref<12x8x128xf32, #tpu.memory_space<vmem>>, vector<1x8x128xf32>
    %93 = vector.shape_cast %92 : vector<1x8x128xf32> to vector<8x128xf32>
    %94 = vector.broadcast %91 : f32 to vector<8x128xf32>
    %95 = arith.mulf %94, %93 : vector<8x128xf32>
    %96 = arith.addf %90, %95 : vector<8x128xf32>
    %c3_68 = arith.constant 3 : index
    %c1_69 = arith.constant 1 : index
    %97 = memref.load %arg1[%c3_68, %c1_69] : memref<12x8xf32, #tpu.memory_space<smem>>
    %c3_70 = arith.constant 3 : index
    %c0_71 = arith.constant 0 : index
    %c0_72 = arith.constant 0 : index
    %98 = vector.load %arg2[%c3_70, %c0_71, %c0_72] : memref<12x8x128xf32, #tpu.memory_space<vmem>>, vector<1x8x128xf32>
    %99 = vector.shape_cast %98 : vector<1x8x128xf32> to vector<8x128xf32>
    %100 = vector.broadcast %97 : f32 to vector<8x128xf32>
    %101 = arith.mulf %100, %99 : vector<8x128xf32>
    %102 = arith.addf %96, %101 : vector<8x128xf32>
    %c4_73 = arith.constant 4 : index
    %c1_74 = arith.constant 1 : index
    %103 = memref.load %arg1[%c4_73, %c1_74] : memref<12x8xf32, #tpu.memory_space<smem>>
    %c4_75 = arith.constant 4 : index
    %c0_76 = arith.constant 0 : index
    %c0_77 = arith.constant 0 : index
    %104 = vector.load %arg2[%c4_75, %c0_76, %c0_77] : memref<12x8x128xf32, #tpu.memory_space<vmem>>, vector<1x8x128xf32>
    %105 = vector.shape_cast %104 : vector<1x8x128xf32> to vector<8x128xf32>
    %106 = vector.broadcast %103 : f32 to vector<8x128xf32>
    %107 = arith.mulf %106, %105 : vector<8x128xf32>
    %108 = arith.addf %102, %107 : vector<8x128xf32>
    %c5_78 = arith.constant 5 : index
    %c1_79 = arith.constant 1 : index
    %109 = memref.load %arg1[%c5_78, %c1_79] : memref<12x8xf32, #tpu.memory_space<smem>>
    %c5_80 = arith.constant 5 : index
    %c0_81 = arith.constant 0 : index
    %c0_82 = arith.constant 0 : index
    %110 = vector.load %arg2[%c5_80, %c0_81, %c0_82] : memref<12x8x128xf32, #tpu.memory_space<vmem>>, vector<1x8x128xf32>
    %111 = vector.shape_cast %110 : vector<1x8x128xf32> to vector<8x128xf32>
    %112 = vector.broadcast %109 : f32 to vector<8x128xf32>
    %113 = arith.mulf %112, %111 : vector<8x128xf32>
    %114 = arith.addf %108, %113 : vector<8x128xf32>
    %c6_83 = arith.constant 6 : index
    %c1_84 = arith.constant 1 : index
    %115 = memref.load %arg1[%c6_83, %c1_84] : memref<12x8xf32, #tpu.memory_space<smem>>
    %c6_85 = arith.constant 6 : index
    %c0_86 = arith.constant 0 : index
    %c0_87 = arith.constant 0 : index
    %116 = vector.load %arg2[%c6_85, %c0_86, %c0_87] : memref<12x8x128xf32, #tpu.memory_space<vmem>>, vector<1x8x128xf32>
    %117 = vector.shape_cast %116 : vector<1x8x128xf32> to vector<8x128xf32>
    %118 = vector.broadcast %115 : f32 to vector<8x128xf32>
    %119 = arith.mulf %118, %117 : vector<8x128xf32>
    %120 = arith.addf %114, %119 : vector<8x128xf32>
    %c7_88 = arith.constant 7 : index
    %c1_89 = arith.constant 1 : index
    %121 = memref.load %arg1[%c7_88, %c1_89] : memref<12x8xf32, #tpu.memory_space<smem>>
    %c7_90 = arith.constant 7 : index
    %c0_91 = arith.constant 0 : index
    %c0_92 = arith.constant 0 : index
    %122 = vector.load %arg2[%c7_90, %c0_91, %c0_92] : memref<12x8x128xf32, #tpu.memory_space<vmem>>, vector<1x8x128xf32>
    %123 = vector.shape_cast %122 : vector<1x8x128xf32> to vector<8x128xf32>
    %124 = vector.broadcast %121 : f32 to vector<8x128xf32>
    %125 = arith.mulf %124, %123 : vector<8x128xf32>
    %126 = arith.addf %120, %125 : vector<8x128xf32>
    %c8_93 = arith.constant 8 : index
    %c1_94 = arith.constant 1 : index
    %127 = memref.load %arg1[%c8_93, %c1_94] : memref<12x8xf32, #tpu.memory_space<smem>>
    %c8_95 = arith.constant 8 : index
    %c0_96 = arith.constant 0 : index
    %c0_97 = arith.constant 0 : index
    %128 = vector.load %arg2[%c8_95, %c0_96, %c0_97] : memref<12x8x128xf32, #tpu.memory_space<vmem>>, vector<1x8x128xf32>
    %129 = vector.shape_cast %128 : vector<1x8x128xf32> to vector<8x128xf32>
    %130 = vector.broadcast %127 : f32 to vector<8x128xf32>
    %131 = arith.mulf %130, %129 : vector<8x128xf32>
    %132 = arith.addf %126, %131 : vector<8x128xf32>
    %c9_98 = arith.constant 9 : index
    %c1_99 = arith.constant 1 : index
    %133 = memref.load %arg1[%c9_98, %c1_99] : memref<12x8xf32, #tpu.memory_space<smem>>
    %c9_100 = arith.constant 9 : index
    %c0_101 = arith.constant 0 : index
    %c0_102 = arith.constant 0 : index
    %134 = vector.load %arg2[%c9_100, %c0_101, %c0_102] : memref<12x8x128xf32, #tpu.memory_space<vmem>>, vector<1x8x128xf32>
    %135 = vector.shape_cast %134 : vector<1x8x128xf32> to vector<8x128xf32>
    %136 = vector.broadcast %133 : f32 to vector<8x128xf32>
    %137 = arith.mulf %136, %135 : vector<8x128xf32>
    %138 = arith.addf %132, %137 : vector<8x128xf32>
    %c10_103 = arith.constant 10 : index
    %c1_104 = arith.constant 1 : index
    %139 = memref.load %arg1[%c10_103, %c1_104] : memref<12x8xf32, #tpu.memory_space<smem>>
    %c10_105 = arith.constant 10 : index
    %c0_106 = arith.constant 0 : index
    %c0_107 = arith.constant 0 : index
    %140 = vector.load %arg2[%c10_105, %c0_106, %c0_107] : memref<12x8x128xf32, #tpu.memory_space<vmem>>, vector<1x8x128xf32>
    %141 = vector.shape_cast %140 : vector<1x8x128xf32> to vector<8x128xf32>
    %142 = vector.broadcast %139 : f32 to vector<8x128xf32>
    %143 = arith.mulf %142, %141 : vector<8x128xf32>
    %144 = arith.addf %138, %143 : vector<8x128xf32>
    %c11_108 = arith.constant 11 : index
    %c1_109 = arith.constant 1 : index
    %145 = memref.load %arg1[%c11_108, %c1_109] : memref<12x8xf32, #tpu.memory_space<smem>>
    %c11_110 = arith.constant 11 : index
    %c0_111 = arith.constant 0 : index
    %c0_112 = arith.constant 0 : index
    %146 = vector.load %arg2[%c11_110, %c0_111, %c0_112] : memref<12x8x128xf32, #tpu.memory_space<vmem>>, vector<1x8x128xf32>
    %147 = vector.shape_cast %146 : vector<1x8x128xf32> to vector<8x128xf32>
    %148 = vector.broadcast %145 : f32 to vector<8x128xf32>
    %149 = arith.mulf %148, %147 : vector<8x128xf32>
    %150 = arith.addf %144, %149 : vector<8x128xf32>
    %cst_113 = arith.constant 2.000000e-01 : f32
    %151 = vector.broadcast %cst_113 : f32 to vector<8x128xf32>
    %152 = arith.mulf %151, %150 : vector<8x128xf32>
    %153 = arith.maximumf %150, %152 : vector<8x128xf32>
    %154 = arith.truncf %153 : vector<8x128xf32> to vector<8x128xbf16>
    %c1_114 = arith.constant 1 : index
    %c0_115 = arith.constant 0 : index
    %c0_116 = arith.constant 0 : index
    %155 = vector.load %arg3[%c1_114, %c0_115, %c0_116] : memref<8x128x256xbf16, #tpu.memory_space<vmem>>, vector<1x128x256xbf16>
    %156 = vector.shape_cast %155 : vector<1x128x256xbf16> to vector<128x256xbf16>
    %cst_117 = arith.constant dense<0.000000e+00> : vector<8x256xf32>
    %157 = tpu.matmul %154, %156, %cst_117 {dimension_numbers = #tpu.dot_dimension_numbers<[1], [0], [0], [1], [0, 0, 1, 1], [], []>} : vector<8x128xbf16>, vector<128x256xbf16>, vector<8x256xf32> -> vector<8x256xf32>
    %158 = arith.addf %79, %157 : vector<8x256xf32>
    %c0_118 = arith.constant 0 : index
    %c2_119 = arith.constant 2 : index
    %159 = memref.load %arg1[%c0_118, %c2_119] : memref<12x8xf32, #tpu.memory_space<smem>>
    %c0_120 = arith.constant 0 : index
    %c0_121 = arith.constant 0 : index
    %c0_122 = arith.constant 0 : index
    %160 = vector.load %arg2[%c0_120, %c0_121, %c0_122] : memref<12x8x128xf32, #tpu.memory_space<vmem>>, vector<1x8x128xf32>
    %161 = vector.shape_cast %160 : vector<1x8x128xf32> to vector<8x128xf32>
    %162 = vector.broadcast %159 : f32 to vector<8x128xf32>
    %163 = arith.mulf %162, %161 : vector<8x128xf32>
    %c1_123 = arith.constant 1 : index
    %c2_124 = arith.constant 2 : index
    %164 = memref.load %arg1[%c1_123, %c2_124] : memref<12x8xf32, #tpu.memory_space<smem>>
    %c1_125 = arith.constant 1 : index
    %c0_126 = arith.constant 0 : index
    %c0_127 = arith.constant 0 : index
    %165 = vector.load %arg2[%c1_125, %c0_126, %c0_127] : memref<12x8x128xf32, #tpu.memory_space<vmem>>, vector<1x8x128xf32>
    %166 = vector.shape_cast %165 : vector<1x8x128xf32> to vector<8x128xf32>
    %167 = vector.broadcast %164 : f32 to vector<8x128xf32>
    %168 = arith.mulf %167, %166 : vector<8x128xf32>
    %169 = arith.addf %163, %168 : vector<8x128xf32>
    %c2_128 = arith.constant 2 : index
    %c2_129 = arith.constant 2 : index
    %170 = memref.load %arg1[%c2_128, %c2_129] : memref<12x8xf32, #tpu.memory_space<smem>>
    %c2_130 = arith.constant 2 : index
    %c0_131 = arith.constant 0 : index
    %c0_132 = arith.constant 0 : index
    %171 = vector.load %arg2[%c2_130, %c0_131, %c0_132] : memref<12x8x128xf32, #tpu.memory_space<vmem>>, vector<1x8x128xf32>
    %172 = vector.shape_cast %171 : vector<1x8x128xf32> to vector<8x128xf32>
    %173 = vector.broadcast %170 : f32 to vector<8x128xf32>
    %174 = arith.mulf %173, %172 : vector<8x128xf32>
    %175 = arith.addf %169, %174 : vector<8x128xf32>
    %c3_133 = arith.constant 3 : index
    %c2_134 = arith.constant 2 : index
    %176 = memref.load %arg1[%c3_133, %c2_134] : memref<12x8xf32, #tpu.memory_space<smem>>
    %c3_135 = arith.constant 3 : index
    %c0_136 = arith.constant 0 : index
    %c0_137 = arith.constant 0 : index
    %177 = vector.load %arg2[%c3_135, %c0_136, %c0_137] : memref<12x8x128xf32, #tpu.memory_space<vmem>>, vector<1x8x128xf32>
    %178 = vector.shape_cast %177 : vector<1x8x128xf32> to vector<8x128xf32>
    %179 = vector.broadcast %176 : f32 to vector<8x128xf32>
    %180 = arith.mulf %179, %178 : vector<8x128xf32>
    %181 = arith.addf %175, %180 : vector<8x128xf32>
    %c4_138 = arith.constant 4 : index
    %c2_139 = arith.constant 2 : index
    %182 = memref.load %arg1[%c4_138, %c2_139] : memref<12x8xf32, #tpu.memory_space<smem>>
    %c4_140 = arith.constant 4 : index
    %c0_141 = arith.constant 0 : index
    %c0_142 = arith.constant 0 : index
    %183 = vector.load %arg2[%c4_140, %c0_141, %c0_142] : memref<12x8x128xf32, #tpu.memory_space<vmem>>, vector<1x8x128xf32>
    %184 = vector.shape_cast %183 : vector<1x8x128xf32> to vector<8x128xf32>
    %185 = vector.broadcast %182 : f32 to vector<8x128xf32>
    %186 = arith.mulf %185, %184 : vector<8x128xf32>
    %187 = arith.addf %181, %186 : vector<8x128xf32>
    %c5_143 = arith.constant 5 : index
    %c2_144 = arith.constant 2 : index
    %188 = memref.load %arg1[%c5_143, %c2_144] : memref<12x8xf32, #tpu.memory_space<smem>>
    %c5_145 = arith.constant 5 : index
    %c0_146 = arith.constant 0 : index
    %c0_147 = arith.constant 0 : index
    %189 = vector.load %arg2[%c5_145, %c0_146, %c0_147] : memref<12x8x128xf32, #tpu.memory_space<vmem>>, vector<1x8x128xf32>
    %190 = vector.shape_cast %189 : vector<1x8x128xf32> to vector<8x128xf32>
    %191 = vector.broadcast %188 : f32 to vector<8x128xf32>
    %192 = arith.mulf %191, %190 : vector<8x128xf32>
    %193 = arith.addf %187, %192 : vector<8x128xf32>
    %c6_148 = arith.constant 6 : index
    %c2_149 = arith.constant 2 : index
    %194 = memref.load %arg1[%c6_148, %c2_149] : memref<12x8xf32, #tpu.memory_space<smem>>
    %c6_150 = arith.constant 6 : index
    %c0_151 = arith.constant 0 : index
    %c0_152 = arith.constant 0 : index
    %195 = vector.load %arg2[%c6_150, %c0_151, %c0_152] : memref<12x8x128xf32, #tpu.memory_space<vmem>>, vector<1x8x128xf32>
    %196 = vector.shape_cast %195 : vector<1x8x128xf32> to vector<8x128xf32>
    %197 = vector.broadcast %194 : f32 to vector<8x128xf32>
    %198 = arith.mulf %197, %196 : vector<8x128xf32>
    %199 = arith.addf %193, %198 : vector<8x128xf32>
    %c7_153 = arith.constant 7 : index
    %c2_154 = arith.constant 2 : index
    %200 = memref.load %arg1[%c7_153, %c2_154] : memref<12x8xf32, #tpu.memory_space<smem>>
    %c7_155 = arith.constant 7 : index
    %c0_156 = arith.constant 0 : index
    %c0_157 = arith.constant 0 : index
    %201 = vector.load %arg2[%c7_155, %c0_156, %c0_157] : memref<12x8x128xf32, #tpu.memory_space<vmem>>, vector<1x8x128xf32>
    %202 = vector.shape_cast %201 : vector<1x8x128xf32> to vector<8x128xf32>
    %203 = vector.broadcast %200 : f32 to vector<8x128xf32>
    %204 = arith.mulf %203, %202 : vector<8x128xf32>
    %205 = arith.addf %199, %204 : vector<8x128xf32>
    %c8_158 = arith.constant 8 : index
    %c2_159 = arith.constant 2 : index
    %206 = memref.load %arg1[%c8_158, %c2_159] : memref<12x8xf32, #tpu.memory_space<smem>>
    %c8_160 = arith.constant 8 : index
    %c0_161 = arith.constant 0 : index
    %c0_162 = arith.constant 0 : index
    %207 = vector.load %arg2[%c8_160, %c0_161, %c0_162] : memref<12x8x128xf32, #tpu.memory_space<vmem>>, vector<1x8x128xf32>
    %208 = vector.shape_cast %207 : vector<1x8x128xf32> to vector<8x128xf32>
    %209 = vector.broadcast %206 : f32 to vector<8x128xf32>
    %210 = arith.mulf %209, %208 : vector<8x128xf32>
    %211 = arith.addf %205, %210 : vector<8x128xf32>
    %c9_163 = arith.constant 9 : index
    %c2_164 = arith.constant 2 : index
    %212 = memref.load %arg1[%c9_163, %c2_164] : memref<12x8xf32, #tpu.memory_space<smem>>
    %c9_165 = arith.constant 9 : index
    %c0_166 = arith.constant 0 : index
    %c0_167 = arith.constant 0 : index
    %213 = vector.load %arg2[%c9_165, %c0_166, %c0_167] : memref<12x8x128xf32, #tpu.memory_space<vmem>>, vector<1x8x128xf32>
    %214 = vector.shape_cast %213 : vector<1x8x128xf32> to vector<8x128xf32>
    %215 = vector.broadcast %212 : f32 to vector<8x128xf32>
    %216 = arith.mulf %215, %214 : vector<8x128xf32>
    %217 = arith.addf %211, %216 : vector<8x128xf32>
    %c10_168 = arith.constant 10 : index
    %c2_169 = arith.constant 2 : index
    %218 = memref.load %arg1[%c10_168, %c2_169] : memref<12x8xf32, #tpu.memory_space<smem>>
    %c10_170 = arith.constant 10 : index
    %c0_171 = arith.constant 0 : index
    %c0_172 = arith.constant 0 : index
    %219 = vector.load %arg2[%c10_170, %c0_171, %c0_172] : memref<12x8x128xf32, #tpu.memory_space<vmem>>, vector<1x8x128xf32>
    %220 = vector.shape_cast %219 : vector<1x8x128xf32> to vector<8x128xf32>
    %221 = vector.broadcast %218 : f32 to vector<8x128xf32>
    %222 = arith.mulf %221, %220 : vector<8x128xf32>
    %223 = arith.addf %217, %222 : vector<8x128xf32>
    %c11_173 = arith.constant 11 : index
    %c2_174 = arith.constant 2 : index
    %224 = memref.load %arg1[%c11_173, %c2_174] : memref<12x8xf32, #tpu.memory_space<smem>>
    %c11_175 = arith.constant 11 : index
    %c0_176 = arith.constant 0 : index
    %c0_177 = arith.constant 0 : index
    %225 = vector.load %arg2[%c11_175, %c0_176, %c0_177] : memref<12x8x128xf32, #tpu.memory_space<vmem>>, vector<1x8x128xf32>
    %226 = vector.shape_cast %225 : vector<1x8x128xf32> to vector<8x128xf32>
    %227 = vector.broadcast %224 : f32 to vector<8x128xf32>
    %228 = arith.mulf %227, %226 : vector<8x128xf32>
    %229 = arith.addf %223, %228 : vector<8x128xf32>
    %cst_178 = arith.constant 2.000000e-01 : f32
    %230 = vector.broadcast %cst_178 : f32 to vector<8x128xf32>
    %231 = arith.mulf %230, %229 : vector<8x128xf32>
    %232 = arith.maximumf %229, %231 : vector<8x128xf32>
    %233 = arith.truncf %232 : vector<8x128xf32> to vector<8x128xbf16>
    %c2_179 = arith.constant 2 : index
    %c0_180 = arith.constant 0 : index
    %c0_181 = arith.constant 0 : index
    %234 = vector.load %arg3[%c2_179, %c0_180, %c0_181] : memref<8x128x256xbf16, #tpu.memory_space<vmem>>, vector<1x128x256xbf16>
    %235 = vector.shape_cast %234 : vector<1x128x256xbf16> to vector<128x256xbf16>
    %cst_182 = arith.constant dense<0.000000e+00> : vector<8x256xf32>
    %236 = tpu.matmul %233, %235, %cst_182 {dimension_numbers = #tpu.dot_dimension_numbers<[1], [0], [0], [1], [0, 0, 1, 1], [], []>} : vector<8x128xbf16>, vector<128x256xbf16>, vector<8x256xf32> -> vector<8x256xf32>
    %237 = arith.addf %158, %236 : vector<8x256xf32>
    %c0_183 = arith.constant 0 : index
    %c3_184 = arith.constant 3 : index
    %238 = memref.load %arg1[%c0_183, %c3_184] : memref<12x8xf32, #tpu.memory_space<smem>>
    %c0_185 = arith.constant 0 : index
    %c0_186 = arith.constant 0 : index
    %c0_187 = arith.constant 0 : index
    %239 = vector.load %arg2[%c0_185, %c0_186, %c0_187] : memref<12x8x128xf32, #tpu.memory_space<vmem>>, vector<1x8x128xf32>
    %240 = vector.shape_cast %239 : vector<1x8x128xf32> to vector<8x128xf32>
    %241 = vector.broadcast %238 : f32 to vector<8x128xf32>
    %242 = arith.mulf %241, %240 : vector<8x128xf32>
    %c1_188 = arith.constant 1 : index
    %c3_189 = arith.constant 3 : index
    %243 = memref.load %arg1[%c1_188, %c3_189] : memref<12x8xf32, #tpu.memory_space<smem>>
    %c1_190 = arith.constant 1 : index
    %c0_191 = arith.constant 0 : index
    %c0_192 = arith.constant 0 : index
    %244 = vector.load %arg2[%c1_190, %c0_191, %c0_192] : memref<12x8x128xf32, #tpu.memory_space<vmem>>, vector<1x8x128xf32>
    %245 = vector.shape_cast %244 : vector<1x8x128xf32> to vector<8x128xf32>
    %246 = vector.broadcast %243 : f32 to vector<8x128xf32>
    %247 = arith.mulf %246, %245 : vector<8x128xf32>
    %248 = arith.addf %242, %247 : vector<8x128xf32>
    %c2_193 = arith.constant 2 : index
    %c3_194 = arith.constant 3 : index
    %249 = memref.load %arg1[%c2_193, %c3_194] : memref<12x8xf32, #tpu.memory_space<smem>>
    %c2_195 = arith.constant 2 : index
    %c0_196 = arith.constant 0 : index
    %c0_197 = arith.constant 0 : index
    %250 = vector.load %arg2[%c2_195, %c0_196, %c0_197] : memref<12x8x128xf32, #tpu.memory_space<vmem>>, vector<1x8x128xf32>
    %251 = vector.shape_cast %250 : vector<1x8x128xf32> to vector<8x128xf32>
    %252 = vector.broadcast %249 : f32 to vector<8x128xf32>
    %253 = arith.mulf %252, %251 : vector<8x128xf32>
    %254 = arith.addf %248, %253 : vector<8x128xf32>
    %c3_198 = arith.constant 3 : index
    %c3_199 = arith.constant 3 : index
    %255 = memref.load %arg1[%c3_198, %c3_199] : memref<12x8xf32, #tpu.memory_space<smem>>
    %c3_200 = arith.constant 3 : index
    %c0_201 = arith.constant 0 : index
    %c0_202 = arith.constant 0 : index
    %256 = vector.load %arg2[%c3_200, %c0_201, %c0_202] : memref<12x8x128xf32, #tpu.memory_space<vmem>>, vector<1x8x128xf32>
    %257 = vector.shape_cast %256 : vector<1x8x128xf32> to vector<8x128xf32>
    %258 = vector.broadcast %255 : f32 to vector<8x128xf32>
    %259 = arith.mulf %258, %257 : vector<8x128xf32>
    %260 = arith.addf %254, %259 : vector<8x128xf32>
    %c4_203 = arith.constant 4 : index
    %c3_204 = arith.constant 3 : index
    %261 = memref.load %arg1[%c4_203, %c3_204] : memref<12x8xf32, #tpu.memory_space<smem>>
    %c4_205 = arith.constant 4 : index
    %c0_206 = arith.constant 0 : index
    %c0_207 = arith.constant 0 : index
    %262 = vector.load %arg2[%c4_205, %c0_206, %c0_207] : memref<12x8x128xf32, #tpu.memory_space<vmem>>, vector<1x8x128xf32>
    %263 = vector.shape_cast %262 : vector<1x8x128xf32> to vector<8x128xf32>
    %264 = vector.broadcast %261 : f32 to vector<8x128xf32>
    %265 = arith.mulf %264, %263 : vector<8x128xf32>
    %266 = arith.addf %260, %265 : vector<8x128xf32>
    %c5_208 = arith.constant 5 : index
    %c3_209 = arith.constant 3 : index
    %267 = memref.load %arg1[%c5_208, %c3_209] : memref<12x8xf32, #tpu.memory_space<smem>>
    %c5_210 = arith.constant 5 : index
    %c0_211 = arith.constant 0 : index
    %c0_212 = arith.constant 0 : index
    %268 = vector.load %arg2[%c5_210, %c0_211, %c0_212] : memref<12x8x128xf32, #tpu.memory_space<vmem>>, vector<1x8x128xf32>
    %269 = vector.shape_cast %268 : vector<1x8x128xf32> to vector<8x128xf32>
    %270 = vector.broadcast %267 : f32 to vector<8x128xf32>
    %271 = arith.mulf %270, %269 : vector<8x128xf32>
    %272 = arith.addf %266, %271 : vector<8x128xf32>
    %c6_213 = arith.constant 6 : index
    %c3_214 = arith.constant 3 : index
    %273 = memref.load %arg1[%c6_213, %c3_214] : memref<12x8xf32, #tpu.memory_space<smem>>
    %c6_215 = arith.constant 6 : index
    %c0_216 = arith.constant 0 : index
    %c0_217 = arith.constant 0 : index
    %274 = vector.load %arg2[%c6_215, %c0_216, %c0_217] : memref<12x8x128xf32, #tpu.memory_space<vmem>>, vector<1x8x128xf32>
    %275 = vector.shape_cast %274 : vector<1x8x128xf32> to vector<8x128xf32>
    %276 = vector.broadcast %273 : f32 to vector<8x128xf32>
    %277 = arith.mulf %276, %275 : vector<8x128xf32>
    %278 = arith.addf %272, %277 : vector<8x128xf32>
    %c7_218 = arith.constant 7 : index
    %c3_219 = arith.constant 3 : index
    %279 = memref.load %arg1[%c7_218, %c3_219] : memref<12x8xf32, #tpu.memory_space<smem>>
    %c7_220 = arith.constant 7 : index
    %c0_221 = arith.constant 0 : index
    %c0_222 = arith.constant 0 : index
    %280 = vector.load %arg2[%c7_220, %c0_221, %c0_222] : memref<12x8x128xf32, #tpu.memory_space<vmem>>, vector<1x8x128xf32>
    %281 = vector.shape_cast %280 : vector<1x8x128xf32> to vector<8x128xf32>
    %282 = vector.broadcast %279 : f32 to vector<8x128xf32>
    %283 = arith.mulf %282, %281 : vector<8x128xf32>
    %284 = arith.addf %278, %283 : vector<8x128xf32>
    %c8_223 = arith.constant 8 : index
    %c3_224 = arith.constant 3 : index
    %285 = memref.load %arg1[%c8_223, %c3_224] : memref<12x8xf32, #tpu.memory_space<smem>>
    %c8_225 = arith.constant 8 : index
    %c0_226 = arith.constant 0 : index
    %c0_227 = arith.constant 0 : index
    %286 = vector.load %arg2[%c8_225, %c0_226, %c0_227] : memref<12x8x128xf32, #tpu.memory_space<vmem>>, vector<1x8x128xf32>
    %287 = vector.shape_cast %286 : vector<1x8x128xf32> to vector<8x128xf32>
    %288 = vector.broadcast %285 : f32 to vector<8x128xf32>
    %289 = arith.mulf %288, %287 : vector<8x128xf32>
    %290 = arith.addf %284, %289 : vector<8x128xf32>
    %c9_228 = arith.constant 9 : index
    %c3_229 = arith.constant 3 : index
    %291 = memref.load %arg1[%c9_228, %c3_229] : memref<12x8xf32, #tpu.memory_space<smem>>
    %c9_230 = arith.constant 9 : index
    %c0_231 = arith.constant 0 : index
    %c0_232 = arith.constant 0 : index
    %292 = vector.load %arg2[%c9_230, %c0_231, %c0_232] : memref<12x8x128xf32, #tpu.memory_space<vmem>>, vector<1x8x128xf32>
    %293 = vector.shape_cast %292 : vector<1x8x128xf32> to vector<8x128xf32>
    %294 = vector.broadcast %291 : f32 to vector<8x128xf32>
    %295 = arith.mulf %294, %293 : vector<8x128xf32>
    %296 = arith.addf %290, %295 : vector<8x128xf32>
    %c10_233 = arith.constant 10 : index
    %c3_234 = arith.constant 3 : index
    %297 = memref.load %arg1[%c10_233, %c3_234] : memref<12x8xf32, #tpu.memory_space<smem>>
    %c10_235 = arith.constant 10 : index
    %c0_236 = arith.constant 0 : index
    %c0_237 = arith.constant 0 : index
    %298 = vector.load %arg2[%c10_235, %c0_236, %c0_237] : memref<12x8x128xf32, #tpu.memory_space<vmem>>, vector<1x8x128xf32>
    %299 = vector.shape_cast %298 : vector<1x8x128xf32> to vector<8x128xf32>
    %300 = vector.broadcast %297 : f32 to vector<8x128xf32>
    %301 = arith.mulf %300, %299 : vector<8x128xf32>
    %302 = arith.addf %296, %301 : vector<8x128xf32>
    %c11_238 = arith.constant 11 : index
    %c3_239 = arith.constant 3 : index
    %303 = memref.load %arg1[%c11_238, %c3_239] : memref<12x8xf32, #tpu.memory_space<smem>>
    %c11_240 = arith.constant 11 : index
    %c0_241 = arith.constant 0 : index
    %c0_242 = arith.constant 0 : index
    %304 = vector.load %arg2[%c11_240, %c0_241, %c0_242] : memref<12x8x128xf32, #tpu.memory_space<vmem>>, vector<1x8x128xf32>
    %305 = vector.shape_cast %304 : vector<1x8x128xf32> to vector<8x128xf32>
    %306 = vector.broadcast %303 : f32 to vector<8x128xf32>
    %307 = arith.mulf %306, %305 : vector<8x128xf32>
    %308 = arith.addf %302, %307 : vector<8x128xf32>
    %cst_243 = arith.constant 2.000000e-01 : f32
    %309 = vector.broadcast %cst_243 : f32 to vector<8x128xf32>
    %310 = arith.mulf %309, %308 : vector<8x128xf32>
    %311 = arith.maximumf %308, %310 : vector<8x128xf32>
    %312 = arith.truncf %311 : vector<8x128xf32> to vector<8x128xbf16>
    %c3_244 = arith.constant 3 : index
    %c0_245 = arith.constant 0 : index
    %c0_246 = arith.constant 0 : index
    %313 = vector.load %arg3[%c3_244, %c0_245, %c0_246] : memref<8x128x256xbf16, #tpu.memory_space<vmem>>, vector<1x128x256xbf16>
    %314 = vector.shape_cast %313 : vector<1x128x256xbf16> to vector<128x256xbf16>
    %cst_247 = arith.constant dense<0.000000e+00> : vector<8x256xf32>
    %315 = tpu.matmul %312, %314, %cst_247 {dimension_numbers = #tpu.dot_dimension_numbers<[1], [0], [0], [1], [0, 0, 1, 1], [], []>} : vector<8x128xbf16>, vector<128x256xbf16>, vector<8x256xf32> -> vector<8x256xf32>
    %316 = arith.addf %237, %315 : vector<8x256xf32>
    %c0_248 = arith.constant 0 : index
    %c4_249 = arith.constant 4 : index
    %317 = memref.load %arg1[%c0_248, %c4_249] : memref<12x8xf32, #tpu.memory_space<smem>>
    %c0_250 = arith.constant 0 : index
    %c0_251 = arith.constant 0 : index
    %c0_252 = arith.constant 0 : index
    %318 = vector.load %arg2[%c0_250, %c0_251, %c0_252] : memref<12x8x128xf32, #tpu.memory_space<vmem>>, vector<1x8x128xf32>
    %319 = vector.shape_cast %318 : vector<1x8x128xf32> to vector<8x128xf32>
    %320 = vector.broadcast %317 : f32 to vector<8x128xf32>
    %321 = arith.mulf %320, %319 : vector<8x128xf32>
    %c1_253 = arith.constant 1 : index
    %c4_254 = arith.constant 4 : index
    %322 = memref.load %arg1[%c1_253, %c4_254] : memref<12x8xf32, #tpu.memory_space<smem>>
    %c1_255 = arith.constant 1 : index
    %c0_256 = arith.constant 0 : index
    %c0_257 = arith.constant 0 : index
    %323 = vector.load %arg2[%c1_255, %c0_256, %c0_257] : memref<12x8x128xf32, #tpu.memory_space<vmem>>, vector<1x8x128xf32>
    %324 = vector.shape_cast %323 : vector<1x8x128xf32> to vector<8x128xf32>
    %325 = vector.broadcast %322 : f32 to vector<8x128xf32>
    %326 = arith.mulf %325, %324 : vector<8x128xf32>
    %327 = arith.addf %321, %326 : vector<8x128xf32>
    %c2_258 = arith.constant 2 : index
    %c4_259 = arith.constant 4 : index
    %328 = memref.load %arg1[%c2_258, %c4_259] : memref<12x8xf32, #tpu.memory_space<smem>>
    %c2_260 = arith.constant 2 : index
    %c0_261 = arith.constant 0 : index
    %c0_262 = arith.constant 0 : index
    %329 = vector.load %arg2[%c2_260, %c0_261, %c0_262] : memref<12x8x128xf32, #tpu.memory_space<vmem>>, vector<1x8x128xf32>
    %330 = vector.shape_cast %329 : vector<1x8x128xf32> to vector<8x128xf32>
    %331 = vector.broadcast %328 : f32 to vector<8x128xf32>
    %332 = arith.mulf %331, %330 : vector<8x128xf32>
    %333 = arith.addf %327, %332 : vector<8x128xf32>
    %c3_263 = arith.constant 3 : index
    %c4_264 = arith.constant 4 : index
    %334 = memref.load %arg1[%c3_263, %c4_264] : memref<12x8xf32, #tpu.memory_space<smem>>
    %c3_265 = arith.constant 3 : index
    %c0_266 = arith.constant 0 : index
    %c0_267 = arith.constant 0 : index
    %335 = vector.load %arg2[%c3_265, %c0_266, %c0_267] : memref<12x8x128xf32, #tpu.memory_space<vmem>>, vector<1x8x128xf32>
    %336 = vector.shape_cast %335 : vector<1x8x128xf32> to vector<8x128xf32>
    %337 = vector.broadcast %334 : f32 to vector<8x128xf32>
    %338 = arith.mulf %337, %336 : vector<8x128xf32>
    %339 = arith.addf %333, %338 : vector<8x128xf32>
    %c4_268 = arith.constant 4 : index
    %c4_269 = arith.constant 4 : index
    %340 = memref.load %arg1[%c4_268, %c4_269] : memref<12x8xf32, #tpu.memory_space<smem>>
    %c4_270 = arith.constant 4 : index
    %c0_271 = arith.constant 0 : index
    %c0_272 = arith.constant 0 : index
    %341 = vector.load %arg2[%c4_270, %c0_271, %c0_272] : memref<12x8x128xf32, #tpu.memory_space<vmem>>, vector<1x8x128xf32>
    %342 = vector.shape_cast %341 : vector<1x8x128xf32> to vector<8x128xf32>
    %343 = vector.broadcast %340 : f32 to vector<8x128xf32>
    %344 = arith.mulf %343, %342 : vector<8x128xf32>
    %345 = arith.addf %339, %344 : vector<8x128xf32>
    %c5_273 = arith.constant 5 : index
    %c4_274 = arith.constant 4 : index
    %346 = memref.load %arg1[%c5_273, %c4_274] : memref<12x8xf32, #tpu.memory_space<smem>>
    %c5_275 = arith.constant 5 : index
    %c0_276 = arith.constant 0 : index
    %c0_277 = arith.constant 0 : index
    %347 = vector.load %arg2[%c5_275, %c0_276, %c0_277] : memref<12x8x128xf32, #tpu.memory_space<vmem>>, vector<1x8x128xf32>
    %348 = vector.shape_cast %347 : vector<1x8x128xf32> to vector<8x128xf32>
    %349 = vector.broadcast %346 : f32 to vector<8x128xf32>
    %350 = arith.mulf %349, %348 : vector<8x128xf32>
    %351 = arith.addf %345, %350 : vector<8x128xf32>
    %c6_278 = arith.constant 6 : index
    %c4_279 = arith.constant 4 : index
    %352 = memref.load %arg1[%c6_278, %c4_279] : memref<12x8xf32, #tpu.memory_space<smem>>
    %c6_280 = arith.constant 6 : index
    %c0_281 = arith.constant 0 : index
    %c0_282 = arith.constant 0 : index
    %353 = vector.load %arg2[%c6_280, %c0_281, %c0_282] : memref<12x8x128xf32, #tpu.memory_space<vmem>>, vector<1x8x128xf32>
    %354 = vector.shape_cast %353 : vector<1x8x128xf32> to vector<8x128xf32>
    %355 = vector.broadcast %352 : f32 to vector<8x128xf32>
    %356 = arith.mulf %355, %354 : vector<8x128xf32>
    %357 = arith.addf %351, %356 : vector<8x128xf32>
    %c7_283 = arith.constant 7 : index
    %c4_284 = arith.constant 4 : index
    %358 = memref.load %arg1[%c7_283, %c4_284] : memref<12x8xf32, #tpu.memory_space<smem>>
    %c7_285 = arith.constant 7 : index
    %c0_286 = arith.constant 0 : index
    %c0_287 = arith.constant 0 : index
    %359 = vector.load %arg2[%c7_285, %c0_286, %c0_287] : memref<12x8x128xf32, #tpu.memory_space<vmem>>, vector<1x8x128xf32>
    %360 = vector.shape_cast %359 : vector<1x8x128xf32> to vector<8x128xf32>
    %361 = vector.broadcast %358 : f32 to vector<8x128xf32>
    %362 = arith.mulf %361, %360 : vector<8x128xf32>
    %363 = arith.addf %357, %362 : vector<8x128xf32>
    %c8_288 = arith.constant 8 : index
    %c4_289 = arith.constant 4 : index
    %364 = memref.load %arg1[%c8_288, %c4_289] : memref<12x8xf32, #tpu.memory_space<smem>>
    %c8_290 = arith.constant 8 : index
    %c0_291 = arith.constant 0 : index
    %c0_292 = arith.constant 0 : index
    %365 = vector.load %arg2[%c8_290, %c0_291, %c0_292] : memref<12x8x128xf32, #tpu.memory_space<vmem>>, vector<1x8x128xf32>
    %366 = vector.shape_cast %365 : vector<1x8x128xf32> to vector<8x128xf32>
    %367 = vector.broadcast %364 : f32 to vector<8x128xf32>
    %368 = arith.mulf %367, %366 : vector<8x128xf32>
    %369 = arith.addf %363, %368 : vector<8x128xf32>
    %c9_293 = arith.constant 9 : index
    %c4_294 = arith.constant 4 : index
    %370 = memref.load %arg1[%c9_293, %c4_294] : memref<12x8xf32, #tpu.memory_space<smem>>
    %c9_295 = arith.constant 9 : index
    %c0_296 = arith.constant 0 : index
    %c0_297 = arith.constant 0 : index
    %371 = vector.load %arg2[%c9_295, %c0_296, %c0_297] : memref<12x8x128xf32, #tpu.memory_space<vmem>>, vector<1x8x128xf32>
    %372 = vector.shape_cast %371 : vector<1x8x128xf32> to vector<8x128xf32>
    %373 = vector.broadcast %370 : f32 to vector<8x128xf32>
    %374 = arith.mulf %373, %372 : vector<8x128xf32>
    %375 = arith.addf %369, %374 : vector<8x128xf32>
    %c10_298 = arith.constant 10 : index
    %c4_299 = arith.constant 4 : index
    %376 = memref.load %arg1[%c10_298, %c4_299] : memref<12x8xf32, #tpu.memory_space<smem>>
    %c10_300 = arith.constant 10 : index
    %c0_301 = arith.constant 0 : index
    %c0_302 = arith.constant 0 : index
    %377 = vector.load %arg2[%c10_300, %c0_301, %c0_302] : memref<12x8x128xf32, #tpu.memory_space<vmem>>, vector<1x8x128xf32>
    %378 = vector.shape_cast %377 : vector<1x8x128xf32> to vector<8x128xf32>
    %379 = vector.broadcast %376 : f32 to vector<8x128xf32>
    %380 = arith.mulf %379, %378 : vector<8x128xf32>
    %381 = arith.addf %375, %380 : vector<8x128xf32>
    %c11_303 = arith.constant 11 : index
    %c4_304 = arith.constant 4 : index
    %382 = memref.load %arg1[%c11_303, %c4_304] : memref<12x8xf32, #tpu.memory_space<smem>>
    %c11_305 = arith.constant 11 : index
    %c0_306 = arith.constant 0 : index
    %c0_307 = arith.constant 0 : index
    %383 = vector.load %arg2[%c11_305, %c0_306, %c0_307] : memref<12x8x128xf32, #tpu.memory_space<vmem>>, vector<1x8x128xf32>
    %384 = vector.shape_cast %383 : vector<1x8x128xf32> to vector<8x128xf32>
    %385 = vector.broadcast %382 : f32 to vector<8x128xf32>
    %386 = arith.mulf %385, %384 : vector<8x128xf32>
    %387 = arith.addf %381, %386 : vector<8x128xf32>
    %cst_308 = arith.constant 2.000000e-01 : f32
    %388 = vector.broadcast %cst_308 : f32 to vector<8x128xf32>
    %389 = arith.mulf %388, %387 : vector<8x128xf32>
    %390 = arith.maximumf %387, %389 : vector<8x128xf32>
    %391 = arith.truncf %390 : vector<8x128xf32> to vector<8x128xbf16>
    %c4_309 = arith.constant 4 : index
    %c0_310 = arith.constant 0 : index
    %c0_311 = arith.constant 0 : index
    %392 = vector.load %arg3[%c4_309, %c0_310, %c0_311] : memref<8x128x256xbf16, #tpu.memory_space<vmem>>, vector<1x128x256xbf16>
    %393 = vector.shape_cast %392 : vector<1x128x256xbf16> to vector<128x256xbf16>
    %cst_312 = arith.constant dense<0.000000e+00> : vector<8x256xf32>
    %394 = tpu.matmul %391, %393, %cst_312 {dimension_numbers = #tpu.dot_dimension_numbers<[1], [0], [0], [1], [0, 0, 1, 1], [], []>} : vector<8x128xbf16>, vector<128x256xbf16>, vector<8x256xf32> -> vector<8x256xf32>
    %395 = arith.addf %316, %394 : vector<8x256xf32>
    %c0_313 = arith.constant 0 : index
    %c5_314 = arith.constant 5 : index
    %396 = memref.load %arg1[%c0_313, %c5_314] : memref<12x8xf32, #tpu.memory_space<smem>>
    %c0_315 = arith.constant 0 : index
    %c0_316 = arith.constant 0 : index
    %c0_317 = arith.constant 0 : index
    %397 = vector.load %arg2[%c0_315, %c0_316, %c0_317] : memref<12x8x128xf32, #tpu.memory_space<vmem>>, vector<1x8x128xf32>
    %398 = vector.shape_cast %397 : vector<1x8x128xf32> to vector<8x128xf32>
    %399 = vector.broadcast %396 : f32 to vector<8x128xf32>
    %400 = arith.mulf %399, %398 : vector<8x128xf32>
    %c1_318 = arith.constant 1 : index
    %c5_319 = arith.constant 5 : index
    %401 = memref.load %arg1[%c1_318, %c5_319] : memref<12x8xf32, #tpu.memory_space<smem>>
    %c1_320 = arith.constant 1 : index
    %c0_321 = arith.constant 0 : index
    %c0_322 = arith.constant 0 : index
    %402 = vector.load %arg2[%c1_320, %c0_321, %c0_322] : memref<12x8x128xf32, #tpu.memory_space<vmem>>, vector<1x8x128xf32>
    %403 = vector.shape_cast %402 : vector<1x8x128xf32> to vector<8x128xf32>
    %404 = vector.broadcast %401 : f32 to vector<8x128xf32>
    %405 = arith.mulf %404, %403 : vector<8x128xf32>
    %406 = arith.addf %400, %405 : vector<8x128xf32>
    %c2_323 = arith.constant 2 : index
    %c5_324 = arith.constant 5 : index
    %407 = memref.load %arg1[%c2_323, %c5_324] : memref<12x8xf32, #tpu.memory_space<smem>>
    %c2_325 = arith.constant 2 : index
    %c0_326 = arith.constant 0 : index
    %c0_327 = arith.constant 0 : index
    %408 = vector.load %arg2[%c2_325, %c0_326, %c0_327] : memref<12x8x128xf32, #tpu.memory_space<vmem>>, vector<1x8x128xf32>
    %409 = vector.shape_cast %408 : vector<1x8x128xf32> to vector<8x128xf32>
    %410 = vector.broadcast %407 : f32 to vector<8x128xf32>
    %411 = arith.mulf %410, %409 : vector<8x128xf32>
    %412 = arith.addf %406, %411 : vector<8x128xf32>
    %c3_328 = arith.constant 3 : index
    %c5_329 = arith.constant 5 : index
    %413 = memref.load %arg1[%c3_328, %c5_329] : memref<12x8xf32, #tpu.memory_space<smem>>
    %c3_330 = arith.constant 3 : index
    %c0_331 = arith.constant 0 : index
    %c0_332 = arith.constant 0 : index
    %414 = vector.load %arg2[%c3_330, %c0_331, %c0_332] : memref<12x8x128xf32, #tpu.memory_space<vmem>>, vector<1x8x128xf32>
    %415 = vector.shape_cast %414 : vector<1x8x128xf32> to vector<8x128xf32>
    %416 = vector.broadcast %413 : f32 to vector<8x128xf32>
    %417 = arith.mulf %416, %415 : vector<8x128xf32>
    %418 = arith.addf %412, %417 : vector<8x128xf32>
    %c4_333 = arith.constant 4 : index
    %c5_334 = arith.constant 5 : index
    %419 = memref.load %arg1[%c4_333, %c5_334] : memref<12x8xf32, #tpu.memory_space<smem>>
    %c4_335 = arith.constant 4 : index
    %c0_336 = arith.constant 0 : index
    %c0_337 = arith.constant 0 : index
    %420 = vector.load %arg2[%c4_335, %c0_336, %c0_337] : memref<12x8x128xf32, #tpu.memory_space<vmem>>, vector<1x8x128xf32>
    %421 = vector.shape_cast %420 : vector<1x8x128xf32> to vector<8x128xf32>
    %422 = vector.broadcast %419 : f32 to vector<8x128xf32>
    %423 = arith.mulf %422, %421 : vector<8x128xf32>
    %424 = arith.addf %418, %423 : vector<8x128xf32>
    %c5_338 = arith.constant 5 : index
    %c5_339 = arith.constant 5 : index
    %425 = memref.load %arg1[%c5_338, %c5_339] : memref<12x8xf32, #tpu.memory_space<smem>>
    %c5_340 = arith.constant 5 : index
    %c0_341 = arith.constant 0 : index
    %c0_342 = arith.constant 0 : index
    %426 = vector.load %arg2[%c5_340, %c0_341, %c0_342] : memref<12x8x128xf32, #tpu.memory_space<vmem>>, vector<1x8x128xf32>
    %427 = vector.shape_cast %426 : vector<1x8x128xf32> to vector<8x128xf32>
    %428 = vector.broadcast %425 : f32 to vector<8x128xf32>
    %429 = arith.mulf %428, %427 : vector<8x128xf32>
    %430 = arith.addf %424, %429 : vector<8x128xf32>
    %c6_343 = arith.constant 6 : index
    %c5_344 = arith.constant 5 : index
    %431 = memref.load %arg1[%c6_343, %c5_344] : memref<12x8xf32, #tpu.memory_space<smem>>
    %c6_345 = arith.constant 6 : index
    %c0_346 = arith.constant 0 : index
    %c0_347 = arith.constant 0 : index
    %432 = vector.load %arg2[%c6_345, %c0_346, %c0_347] : memref<12x8x128xf32, #tpu.memory_space<vmem>>, vector<1x8x128xf32>
    %433 = vector.shape_cast %432 : vector<1x8x128xf32> to vector<8x128xf32>
    %434 = vector.broadcast %431 : f32 to vector<8x128xf32>
    %435 = arith.mulf %434, %433 : vector<8x128xf32>
    %436 = arith.addf %430, %435 : vector<8x128xf32>
    %c7_348 = arith.constant 7 : index
    %c5_349 = arith.constant 5 : index
    %437 = memref.load %arg1[%c7_348, %c5_349] : memref<12x8xf32, #tpu.memory_space<smem>>
    %c7_350 = arith.constant 7 : index
    %c0_351 = arith.constant 0 : index
    %c0_352 = arith.constant 0 : index
    %438 = vector.load %arg2[%c7_350, %c0_351, %c0_352] : memref<12x8x128xf32, #tpu.memory_space<vmem>>, vector<1x8x128xf32>
    %439 = vector.shape_cast %438 : vector<1x8x128xf32> to vector<8x128xf32>
    %440 = vector.broadcast %437 : f32 to vector<8x128xf32>
    %441 = arith.mulf %440, %439 : vector<8x128xf32>
    %442 = arith.addf %436, %441 : vector<8x128xf32>
    %c8_353 = arith.constant 8 : index
    %c5_354 = arith.constant 5 : index
    %443 = memref.load %arg1[%c8_353, %c5_354] : memref<12x8xf32, #tpu.memory_space<smem>>
    %c8_355 = arith.constant 8 : index
    %c0_356 = arith.constant 0 : index
    %c0_357 = arith.constant 0 : index
    %444 = vector.load %arg2[%c8_355, %c0_356, %c0_357] : memref<12x8x128xf32, #tpu.memory_space<vmem>>, vector<1x8x128xf32>
    %445 = vector.shape_cast %444 : vector<1x8x128xf32> to vector<8x128xf32>
    %446 = vector.broadcast %443 : f32 to vector<8x128xf32>
    %447 = arith.mulf %446, %445 : vector<8x128xf32>
    %448 = arith.addf %442, %447 : vector<8x128xf32>
    %c9_358 = arith.constant 9 : index
    %c5_359 = arith.constant 5 : index
    %449 = memref.load %arg1[%c9_358, %c5_359] : memref<12x8xf32, #tpu.memory_space<smem>>
    %c9_360 = arith.constant 9 : index
    %c0_361 = arith.constant 0 : index
    %c0_362 = arith.constant 0 : index
    %450 = vector.load %arg2[%c9_360, %c0_361, %c0_362] : memref<12x8x128xf32, #tpu.memory_space<vmem>>, vector<1x8x128xf32>
    %451 = vector.shape_cast %450 : vector<1x8x128xf32> to vector<8x128xf32>
    %452 = vector.broadcast %449 : f32 to vector<8x128xf32>
    %453 = arith.mulf %452, %451 : vector<8x128xf32>
    %454 = arith.addf %448, %453 : vector<8x128xf32>
    %c10_363 = arith.constant 10 : index
    %c5_364 = arith.constant 5 : index
    %455 = memref.load %arg1[%c10_363, %c5_364] : memref<12x8xf32, #tpu.memory_space<smem>>
    %c10_365 = arith.constant 10 : index
    %c0_366 = arith.constant 0 : index
    %c0_367 = arith.constant 0 : index
    %456 = vector.load %arg2[%c10_365, %c0_366, %c0_367] : memref<12x8x128xf32, #tpu.memory_space<vmem>>, vector<1x8x128xf32>
    %457 = vector.shape_cast %456 : vector<1x8x128xf32> to vector<8x128xf32>
    %458 = vector.broadcast %455 : f32 to vector<8x128xf32>
    %459 = arith.mulf %458, %457 : vector<8x128xf32>
    %460 = arith.addf %454, %459 : vector<8x128xf32>
    %c11_368 = arith.constant 11 : index
    %c5_369 = arith.constant 5 : index
    %461 = memref.load %arg1[%c11_368, %c5_369] : memref<12x8xf32, #tpu.memory_space<smem>>
    %c11_370 = arith.constant 11 : index
    %c0_371 = arith.constant 0 : index
    %c0_372 = arith.constant 0 : index
    %462 = vector.load %arg2[%c11_370, %c0_371, %c0_372] : memref<12x8x128xf32, #tpu.memory_space<vmem>>, vector<1x8x128xf32>
    %463 = vector.shape_cast %462 : vector<1x8x128xf32> to vector<8x128xf32>
    %464 = vector.broadcast %461 : f32 to vector<8x128xf32>
    %465 = arith.mulf %464, %463 : vector<8x128xf32>
    %466 = arith.addf %460, %465 : vector<8x128xf32>
    %cst_373 = arith.constant 2.000000e-01 : f32
    %467 = vector.broadcast %cst_373 : f32 to vector<8x128xf32>
    %468 = arith.mulf %467, %466 : vector<8x128xf32>
    %469 = arith.maximumf %466, %468 : vector<8x128xf32>
    %470 = arith.truncf %469 : vector<8x128xf32> to vector<8x128xbf16>
    %c5_374 = arith.constant 5 : index
    %c0_375 = arith.constant 0 : index
    %c0_376 = arith.constant 0 : index
    %471 = vector.load %arg3[%c5_374, %c0_375, %c0_376] : memref<8x128x256xbf16, #tpu.memory_space<vmem>>, vector<1x128x256xbf16>
    %472 = vector.shape_cast %471 : vector<1x128x256xbf16> to vector<128x256xbf16>
    %cst_377 = arith.constant dense<0.000000e+00> : vector<8x256xf32>
    %473 = tpu.matmul %470, %472, %cst_377 {dimension_numbers = #tpu.dot_dimension_numbers<[1], [0], [0], [1], [0, 0, 1, 1], [], []>} : vector<8x128xbf16>, vector<128x256xbf16>, vector<8x256xf32> -> vector<8x256xf32>
    %474 = arith.addf %395, %473 : vector<8x256xf32>
    %c0_378 = arith.constant 0 : index
    %c6_379 = arith.constant 6 : index
    %475 = memref.load %arg1[%c0_378, %c6_379] : memref<12x8xf32, #tpu.memory_space<smem>>
    %c0_380 = arith.constant 0 : index
    %c0_381 = arith.constant 0 : index
    %c0_382 = arith.constant 0 : index
    %476 = vector.load %arg2[%c0_380, %c0_381, %c0_382] : memref<12x8x128xf32, #tpu.memory_space<vmem>>, vector<1x8x128xf32>
    %477 = vector.shape_cast %476 : vector<1x8x128xf32> to vector<8x128xf32>
    %478 = vector.broadcast %475 : f32 to vector<8x128xf32>
    %479 = arith.mulf %478, %477 : vector<8x128xf32>
    %c1_383 = arith.constant 1 : index
    %c6_384 = arith.constant 6 : index
    %480 = memref.load %arg1[%c1_383, %c6_384] : memref<12x8xf32, #tpu.memory_space<smem>>
    %c1_385 = arith.constant 1 : index
    %c0_386 = arith.constant 0 : index
    %c0_387 = arith.constant 0 : index
    %481 = vector.load %arg2[%c1_385, %c0_386, %c0_387] : memref<12x8x128xf32, #tpu.memory_space<vmem>>, vector<1x8x128xf32>
    %482 = vector.shape_cast %481 : vector<1x8x128xf32> to vector<8x128xf32>
    %483 = vector.broadcast %480 : f32 to vector<8x128xf32>
    %484 = arith.mulf %483, %482 : vector<8x128xf32>
    %485 = arith.addf %479, %484 : vector<8x128xf32>
    %c2_388 = arith.constant 2 : index
    %c6_389 = arith.constant 6 : index
    %486 = memref.load %arg1[%c2_388, %c6_389] : memref<12x8xf32, #tpu.memory_space<smem>>
    %c2_390 = arith.constant 2 : index
    %c0_391 = arith.constant 0 : index
    %c0_392 = arith.constant 0 : index
    %487 = vector.load %arg2[%c2_390, %c0_391, %c0_392] : memref<12x8x128xf32, #tpu.memory_space<vmem>>, vector<1x8x128xf32>
    %488 = vector.shape_cast %487 : vector<1x8x128xf32> to vector<8x128xf32>
    %489 = vector.broadcast %486 : f32 to vector<8x128xf32>
    %490 = arith.mulf %489, %488 : vector<8x128xf32>
    %491 = arith.addf %485, %490 : vector<8x128xf32>
    %c3_393 = arith.constant 3 : index
    %c6_394 = arith.constant 6 : index
    %492 = memref.load %arg1[%c3_393, %c6_394] : memref<12x8xf32, #tpu.memory_space<smem>>
    %c3_395 = arith.constant 3 : index
    %c0_396 = arith.constant 0 : index
    %c0_397 = arith.constant 0 : index
    %493 = vector.load %arg2[%c3_395, %c0_396, %c0_397] : memref<12x8x128xf32, #tpu.memory_space<vmem>>, vector<1x8x128xf32>
    %494 = vector.shape_cast %493 : vector<1x8x128xf32> to vector<8x128xf32>
    %495 = vector.broadcast %492 : f32 to vector<8x128xf32>
    %496 = arith.mulf %495, %494 : vector<8x128xf32>
    %497 = arith.addf %491, %496 : vector<8x128xf32>
    %c4_398 = arith.constant 4 : index
    %c6_399 = arith.constant 6 : index
    %498 = memref.load %arg1[%c4_398, %c6_399] : memref<12x8xf32, #tpu.memory_space<smem>>
    %c4_400 = arith.constant 4 : index
    %c0_401 = arith.constant 0 : index
    %c0_402 = arith.constant 0 : index
    %499 = vector.load %arg2[%c4_400, %c0_401, %c0_402] : memref<12x8x128xf32, #tpu.memory_space<vmem>>, vector<1x8x128xf32>
    %500 = vector.shape_cast %499 : vector<1x8x128xf32> to vector<8x128xf32>
    %501 = vector.broadcast %498 : f32 to vector<8x128xf32>
    %502 = arith.mulf %501, %500 : vector<8x128xf32>
    %503 = arith.addf %497, %502 : vector<8x128xf32>
    %c5_403 = arith.constant 5 : index
    %c6_404 = arith.constant 6 : index
    %504 = memref.load %arg1[%c5_403, %c6_404] : memref<12x8xf32, #tpu.memory_space<smem>>
    %c5_405 = arith.constant 5 : index
    %c0_406 = arith.constant 0 : index
    %c0_407 = arith.constant 0 : index
    %505 = vector.load %arg2[%c5_405, %c0_406, %c0_407] : memref<12x8x128xf32, #tpu.memory_space<vmem>>, vector<1x8x128xf32>
    %506 = vector.shape_cast %505 : vector<1x8x128xf32> to vector<8x128xf32>
    %507 = vector.broadcast %504 : f32 to vector<8x128xf32>
    %508 = arith.mulf %507, %506 : vector<8x128xf32>
    %509 = arith.addf %503, %508 : vector<8x128xf32>
    %c6_408 = arith.constant 6 : index
    %c6_409 = arith.constant 6 : index
    %510 = memref.load %arg1[%c6_408, %c6_409] : memref<12x8xf32, #tpu.memory_space<smem>>
    %c6_410 = arith.constant 6 : index
    %c0_411 = arith.constant 0 : index
    %c0_412 = arith.constant 0 : index
    %511 = vector.load %arg2[%c6_410, %c0_411, %c0_412] : memref<12x8x128xf32, #tpu.memory_space<vmem>>, vector<1x8x128xf32>
    %512 = vector.shape_cast %511 : vector<1x8x128xf32> to vector<8x128xf32>
    %513 = vector.broadcast %510 : f32 to vector<8x128xf32>
    %514 = arith.mulf %513, %512 : vector<8x128xf32>
    %515 = arith.addf %509, %514 : vector<8x128xf32>
    %c7_413 = arith.constant 7 : index
    %c6_414 = arith.constant 6 : index
    %516 = memref.load %arg1[%c7_413, %c6_414] : memref<12x8xf32, #tpu.memory_space<smem>>
    %c7_415 = arith.constant 7 : index
    %c0_416 = arith.constant 0 : index
    %c0_417 = arith.constant 0 : index
    %517 = vector.load %arg2[%c7_415, %c0_416, %c0_417] : memref<12x8x128xf32, #tpu.memory_space<vmem>>, vector<1x8x128xf32>
    %518 = vector.shape_cast %517 : vector<1x8x128xf32> to vector<8x128xf32>
    %519 = vector.broadcast %516 : f32 to vector<8x128xf32>
    %520 = arith.mulf %519, %518 : vector<8x128xf32>
    %521 = arith.addf %515, %520 : vector<8x128xf32>
    %c8_418 = arith.constant 8 : index
    %c6_419 = arith.constant 6 : index
    %522 = memref.load %arg1[%c8_418, %c6_419] : memref<12x8xf32, #tpu.memory_space<smem>>
    %c8_420 = arith.constant 8 : index
    %c0_421 = arith.constant 0 : index
    %c0_422 = arith.constant 0 : index
    %523 = vector.load %arg2[%c8_420, %c0_421, %c0_422] : memref<12x8x128xf32, #tpu.memory_space<vmem>>, vector<1x8x128xf32>
    %524 = vector.shape_cast %523 : vector<1x8x128xf32> to vector<8x128xf32>
    %525 = vector.broadcast %522 : f32 to vector<8x128xf32>
    %526 = arith.mulf %525, %524 : vector<8x128xf32>
    %527 = arith.addf %521, %526 : vector<8x128xf32>
    %c9_423 = arith.constant 9 : index
    %c6_424 = arith.constant 6 : index
    %528 = memref.load %arg1[%c9_423, %c6_424] : memref<12x8xf32, #tpu.memory_space<smem>>
    %c9_425 = arith.constant 9 : index
    %c0_426 = arith.constant 0 : index
    %c0_427 = arith.constant 0 : index
    %529 = vector.load %arg2[%c9_425, %c0_426, %c0_427] : memref<12x8x128xf32, #tpu.memory_space<vmem>>, vector<1x8x128xf32>
    %530 = vector.shape_cast %529 : vector<1x8x128xf32> to vector<8x128xf32>
    %531 = vector.broadcast %528 : f32 to vector<8x128xf32>
    %532 = arith.mulf %531, %530 : vector<8x128xf32>
    %533 = arith.addf %527, %532 : vector<8x128xf32>
    %c10_428 = arith.constant 10 : index
    %c6_429 = arith.constant 6 : index
    %534 = memref.load %arg1[%c10_428, %c6_429] : memref<12x8xf32, #tpu.memory_space<smem>>
    %c10_430 = arith.constant 10 : index
    %c0_431 = arith.constant 0 : index
    %c0_432 = arith.constant 0 : index
    %535 = vector.load %arg2[%c10_430, %c0_431, %c0_432] : memref<12x8x128xf32, #tpu.memory_space<vmem>>, vector<1x8x128xf32>
    %536 = vector.shape_cast %535 : vector<1x8x128xf32> to vector<8x128xf32>
    %537 = vector.broadcast %534 : f32 to vector<8x128xf32>
    %538 = arith.mulf %537, %536 : vector<8x128xf32>
    %539 = arith.addf %533, %538 : vector<8x128xf32>
    %c11_433 = arith.constant 11 : index
    %c6_434 = arith.constant 6 : index
    %540 = memref.load %arg1[%c11_433, %c6_434] : memref<12x8xf32, #tpu.memory_space<smem>>
    %c11_435 = arith.constant 11 : index
    %c0_436 = arith.constant 0 : index
    %c0_437 = arith.constant 0 : index
    %541 = vector.load %arg2[%c11_435, %c0_436, %c0_437] : memref<12x8x128xf32, #tpu.memory_space<vmem>>, vector<1x8x128xf32>
    %542 = vector.shape_cast %541 : vector<1x8x128xf32> to vector<8x128xf32>
    %543 = vector.broadcast %540 : f32 to vector<8x128xf32>
    %544 = arith.mulf %543, %542 : vector<8x128xf32>
    %545 = arith.addf %539, %544 : vector<8x128xf32>
    %cst_438 = arith.constant 2.000000e-01 : f32
    %546 = vector.broadcast %cst_438 : f32 to vector<8x128xf32>
    %547 = arith.mulf %546, %545 : vector<8x128xf32>
    %548 = arith.maximumf %545, %547 : vector<8x128xf32>
    %549 = arith.truncf %548 : vector<8x128xf32> to vector<8x128xbf16>
    %c6_439 = arith.constant 6 : index
    %c0_440 = arith.constant 0 : index
    %c0_441 = arith.constant 0 : index
    %550 = vector.load %arg3[%c6_439, %c0_440, %c0_441] : memref<8x128x256xbf16, #tpu.memory_space<vmem>>, vector<1x128x256xbf16>
    %551 = vector.shape_cast %550 : vector<1x128x256xbf16> to vector<128x256xbf16>
    %cst_442 = arith.constant dense<0.000000e+00> : vector<8x256xf32>
    %552 = tpu.matmul %549, %551, %cst_442 {dimension_numbers = #tpu.dot_dimension_numbers<[1], [0], [0], [1], [0, 0, 1, 1], [], []>} : vector<8x128xbf16>, vector<128x256xbf16>, vector<8x256xf32> -> vector<8x256xf32>
    %553 = arith.addf %474, %552 : vector<8x256xf32>
    %c0_443 = arith.constant 0 : index
    %c7_444 = arith.constant 7 : index
    %554 = memref.load %arg1[%c0_443, %c7_444] : memref<12x8xf32, #tpu.memory_space<smem>>
    %c0_445 = arith.constant 0 : index
    %c0_446 = arith.constant 0 : index
    %c0_447 = arith.constant 0 : index
    %555 = vector.load %arg2[%c0_445, %c0_446, %c0_447] : memref<12x8x128xf32, #tpu.memory_space<vmem>>, vector<1x8x128xf32>
    %556 = vector.shape_cast %555 : vector<1x8x128xf32> to vector<8x128xf32>
    %557 = vector.broadcast %554 : f32 to vector<8x128xf32>
    %558 = arith.mulf %557, %556 : vector<8x128xf32>
    %c1_448 = arith.constant 1 : index
    %c7_449 = arith.constant 7 : index
    %559 = memref.load %arg1[%c1_448, %c7_449] : memref<12x8xf32, #tpu.memory_space<smem>>
    %c1_450 = arith.constant 1 : index
    %c0_451 = arith.constant 0 : index
    %c0_452 = arith.constant 0 : index
    %560 = vector.load %arg2[%c1_450, %c0_451, %c0_452] : memref<12x8x128xf32, #tpu.memory_space<vmem>>, vector<1x8x128xf32>
    %561 = vector.shape_cast %560 : vector<1x8x128xf32> to vector<8x128xf32>
    %562 = vector.broadcast %559 : f32 to vector<8x128xf32>
    %563 = arith.mulf %562, %561 : vector<8x128xf32>
    %564 = arith.addf %558, %563 : vector<8x128xf32>
    %c2_453 = arith.constant 2 : index
    %c7_454 = arith.constant 7 : index
    %565 = memref.load %arg1[%c2_453, %c7_454] : memref<12x8xf32, #tpu.memory_space<smem>>
    %c2_455 = arith.constant 2 : index
    %c0_456 = arith.constant 0 : index
    %c0_457 = arith.constant 0 : index
    %566 = vector.load %arg2[%c2_455, %c0_456, %c0_457] : memref<12x8x128xf32, #tpu.memory_space<vmem>>, vector<1x8x128xf32>
    %567 = vector.shape_cast %566 : vector<1x8x128xf32> to vector<8x128xf32>
    %568 = vector.broadcast %565 : f32 to vector<8x128xf32>
    %569 = arith.mulf %568, %567 : vector<8x128xf32>
    %570 = arith.addf %564, %569 : vector<8x128xf32>
    %c3_458 = arith.constant 3 : index
    %c7_459 = arith.constant 7 : index
    %571 = memref.load %arg1[%c3_458, %c7_459] : memref<12x8xf32, #tpu.memory_space<smem>>
    %c3_460 = arith.constant 3 : index
    %c0_461 = arith.constant 0 : index
    %c0_462 = arith.constant 0 : index
    %572 = vector.load %arg2[%c3_460, %c0_461, %c0_462] : memref<12x8x128xf32, #tpu.memory_space<vmem>>, vector<1x8x128xf32>
    %573 = vector.shape_cast %572 : vector<1x8x128xf32> to vector<8x128xf32>
    %574 = vector.broadcast %571 : f32 to vector<8x128xf32>
    %575 = arith.mulf %574, %573 : vector<8x128xf32>
    %576 = arith.addf %570, %575 : vector<8x128xf32>
    %c4_463 = arith.constant 4 : index
    %c7_464 = arith.constant 7 : index
    %577 = memref.load %arg1[%c4_463, %c7_464] : memref<12x8xf32, #tpu.memory_space<smem>>
    %c4_465 = arith.constant 4 : index
    %c0_466 = arith.constant 0 : index
    %c0_467 = arith.constant 0 : index
    %578 = vector.load %arg2[%c4_465, %c0_466, %c0_467] : memref<12x8x128xf32, #tpu.memory_space<vmem>>, vector<1x8x128xf32>
    %579 = vector.shape_cast %578 : vector<1x8x128xf32> to vector<8x128xf32>
    %580 = vector.broadcast %577 : f32 to vector<8x128xf32>
    %581 = arith.mulf %580, %579 : vector<8x128xf32>
    %582 = arith.addf %576, %581 : vector<8x128xf32>
    %c5_468 = arith.constant 5 : index
    %c7_469 = arith.constant 7 : index
    %583 = memref.load %arg1[%c5_468, %c7_469] : memref<12x8xf32, #tpu.memory_space<smem>>
    %c5_470 = arith.constant 5 : index
    %c0_471 = arith.constant 0 : index
    %c0_472 = arith.constant 0 : index
    %584 = vector.load %arg2[%c5_470, %c0_471, %c0_472] : memref<12x8x128xf32, #tpu.memory_space<vmem>>, vector<1x8x128xf32>
    %585 = vector.shape_cast %584 : vector<1x8x128xf32> to vector<8x128xf32>
    %586 = vector.broadcast %583 : f32 to vector<8x128xf32>
    %587 = arith.mulf %586, %585 : vector<8x128xf32>
    %588 = arith.addf %582, %587 : vector<8x128xf32>
    %c6_473 = arith.constant 6 : index
    %c7_474 = arith.constant 7 : index
    %589 = memref.load %arg1[%c6_473, %c7_474] : memref<12x8xf32, #tpu.memory_space<smem>>
    %c6_475 = arith.constant 6 : index
    %c0_476 = arith.constant 0 : index
    %c0_477 = arith.constant 0 : index
    %590 = vector.load %arg2[%c6_475, %c0_476, %c0_477] : memref<12x8x128xf32, #tpu.memory_space<vmem>>, vector<1x8x128xf32>
    %591 = vector.shape_cast %590 : vector<1x8x128xf32> to vector<8x128xf32>
    %592 = vector.broadcast %589 : f32 to vector<8x128xf32>
    %593 = arith.mulf %592, %591 : vector<8x128xf32>
    %594 = arith.addf %588, %593 : vector<8x128xf32>
    %c7_478 = arith.constant 7 : index
    %c7_479 = arith.constant 7 : index
    %595 = memref.load %arg1[%c7_478, %c7_479] : memref<12x8xf32, #tpu.memory_space<smem>>
    %c7_480 = arith.constant 7 : index
    %c0_481 = arith.constant 0 : index
    %c0_482 = arith.constant 0 : index
    %596 = vector.load %arg2[%c7_480, %c0_481, %c0_482] : memref<12x8x128xf32, #tpu.memory_space<vmem>>, vector<1x8x128xf32>
    %597 = vector.shape_cast %596 : vector<1x8x128xf32> to vector<8x128xf32>
    %598 = vector.broadcast %595 : f32 to vector<8x128xf32>
    %599 = arith.mulf %598, %597 : vector<8x128xf32>
    %600 = arith.addf %594, %599 : vector<8x128xf32>
    %c8_483 = arith.constant 8 : index
    %c7_484 = arith.constant 7 : index
    %601 = memref.load %arg1[%c8_483, %c7_484] : memref<12x8xf32, #tpu.memory_space<smem>>
    %c8_485 = arith.constant 8 : index
    %c0_486 = arith.constant 0 : index
    %c0_487 = arith.constant 0 : index
    %602 = vector.load %arg2[%c8_485, %c0_486, %c0_487] : memref<12x8x128xf32, #tpu.memory_space<vmem>>, vector<1x8x128xf32>
    %603 = vector.shape_cast %602 : vector<1x8x128xf32> to vector<8x128xf32>
    %604 = vector.broadcast %601 : f32 to vector<8x128xf32>
    %605 = arith.mulf %604, %603 : vector<8x128xf32>
    %606 = arith.addf %600, %605 : vector<8x128xf32>
    %c9_488 = arith.constant 9 : index
    %c7_489 = arith.constant 7 : index
    %607 = memref.load %arg1[%c9_488, %c7_489] : memref<12x8xf32, #tpu.memory_space<smem>>
    %c9_490 = arith.constant 9 : index
    %c0_491 = arith.constant 0 : index
    %c0_492 = arith.constant 0 : index
    %608 = vector.load %arg2[%c9_490, %c0_491, %c0_492] : memref<12x8x128xf32, #tpu.memory_space<vmem>>, vector<1x8x128xf32>
    %609 = vector.shape_cast %608 : vector<1x8x128xf32> to vector<8x128xf32>
    %610 = vector.broadcast %607 : f32 to vector<8x128xf32>
    %611 = arith.mulf %610, %609 : vector<8x128xf32>
    %612 = arith.addf %606, %611 : vector<8x128xf32>
    %c10_493 = arith.constant 10 : index
    %c7_494 = arith.constant 7 : index
    %613 = memref.load %arg1[%c10_493, %c7_494] : memref<12x8xf32, #tpu.memory_space<smem>>
    %c10_495 = arith.constant 10 : index
    %c0_496 = arith.constant 0 : index
    %c0_497 = arith.constant 0 : index
    %614 = vector.load %arg2[%c10_495, %c0_496, %c0_497] : memref<12x8x128xf32, #tpu.memory_space<vmem>>, vector<1x8x128xf32>
    %615 = vector.shape_cast %614 : vector<1x8x128xf32> to vector<8x128xf32>
    %616 = vector.broadcast %613 : f32 to vector<8x128xf32>
    %617 = arith.mulf %616, %615 : vector<8x128xf32>
    %618 = arith.addf %612, %617 : vector<8x128xf32>
    %c11_498 = arith.constant 11 : index
    %c7_499 = arith.constant 7 : index
    %619 = memref.load %arg1[%c11_498, %c7_499] : memref<12x8xf32, #tpu.memory_space<smem>>
    %c11_500 = arith.constant 11 : index
    %c0_501 = arith.constant 0 : index
    %c0_502 = arith.constant 0 : index
    %620 = vector.load %arg2[%c11_500, %c0_501, %c0_502] : memref<12x8x128xf32, #tpu.memory_space<vmem>>, vector<1x8x128xf32>
    %621 = vector.shape_cast %620 : vector<1x8x128xf32> to vector<8x128xf32>
    %622 = vector.broadcast %619 : f32 to vector<8x128xf32>
    %623 = arith.mulf %622, %621 : vector<8x128xf32>
    %624 = arith.addf %618, %623 : vector<8x128xf32>
    %cst_503 = arith.constant 2.000000e-01 : f32
    %625 = vector.broadcast %cst_503 : f32 to vector<8x128xf32>
    %626 = arith.mulf %625, %624 : vector<8x128xf32>
    %627 = arith.maximumf %624, %626 : vector<8x128xf32>
    %628 = arith.truncf %627 : vector<8x128xf32> to vector<8x128xbf16>
    %c7_504 = arith.constant 7 : index
    %c0_505 = arith.constant 0 : index
    %c0_506 = arith.constant 0 : index
    %629 = vector.load %arg3[%c7_504, %c0_505, %c0_506] : memref<8x128x256xbf16, #tpu.memory_space<vmem>>, vector<1x128x256xbf16>
    %630 = vector.shape_cast %629 : vector<1x128x256xbf16> to vector<128x256xbf16>
    %cst_507 = arith.constant dense<0.000000e+00> : vector<8x256xf32>
    %631 = tpu.matmul %628, %630, %cst_507 {dimension_numbers = #tpu.dot_dimension_numbers<[1], [0], [0], [1], [0, 0, 1, 1], [], []>} : vector<8x128xbf16>, vector<128x256xbf16>, vector<8x256xf32> -> vector<8x256xf32>
    %632 = arith.addf %553, %631 : vector<8x256xf32>
    %cst_508 = arith.constant 2.000000e-01 : f32
    %633 = vector.broadcast %cst_508 : f32 to vector<8x256xf32>
    %634 = arith.mulf %633, %632 : vector<8x256xf32>
    %635 = arith.maximumf %632, %634 : vector<8x256xf32>
    %636 = arith.truncf %635 : vector<8x256xf32> to vector<8x256xbf16>
    %c0_509 = arith.constant 0 : index
    %c0_510 = arith.constant 0 : index
    %637 = vector.load %arg4[%c0_509, %c0_510] : memref<256x128xbf16, #tpu.memory_space<vmem>>, vector<256x128xbf16>
    %cst_511 = arith.constant dense<0.000000e+00> : vector<8x128xf32>
    %638 = tpu.matmul %636, %637, %cst_511 {dimension_numbers = #tpu.dot_dimension_numbers<[1], [0], [0], [1], [0, 0, 1, 1], [], []>} : vector<8x256xbf16>, vector<256x128xbf16>, vector<8x128xf32> -> vector<8x128xf32>
    %cst_512 = arith.constant 0.000000e+00 : f32
    %639 = vector.broadcast %cst_512 : f32 to vector<8x128xf32>
    %640 = arith.subf %639, %638 : vector<8x128xf32>
    %641 = math.exp %640 : vector<8x128xf32>
    %cst_513 = arith.constant 1.000000e+00 : f32
    %642 = vector.broadcast %cst_513 : f32 to vector<8x128xf32>
    %643 = arith.addf %642, %641 : vector<8x128xf32>
    %644 = tpu.reciprocal %643 {approx = true} : vector<8x128xf32> -> vector<8x128xf32>
    %c0_514 = arith.constant 0 : index
    %c0_515 = arith.constant 0 : index
    %645 = vector.load %arg5[%c0_514, %c0_515] : memref<8x128xf32, #tpu.memory_space<vmem>>, vector<8x128xf32>
    tpu.vector_store %arg5[%c0_514, %c0_515], %644 {strides = array<i32>} : memref<8x128xf32, #tpu.memory_space<vmem>>, vector<8x128xf32>,
    return
  }
  func.func @transform_0(%arg0: i32) -> (i32, i32) {
    %c0_i32 = arith.constant 0 : i32
    %c0_i32_0 = arith.constant 0 : i32
    %c0_i32_1 = arith.constant 0 : i32
    return %c0_i32, %c0_i32_0 : i32, i32
  }
  func.func @transform_1(%arg0: i32) -> (i32, i32, i32) {
    %c0_i32 = arith.constant 0 : i32
    %c0_i32_0 = arith.constant 0 : i32
    %c0_i32_1 = arith.constant 0 : i32
    return %c0_i32, %arg0, %c0_i32_0 : i32, i32, i32
  }
  func.func @transform_2(%arg0: i32) -> (i32, i32, i32) {
    %c0_i32 = arith.constant 0 : i32
    %c0_i32_0 = arith.constant 0 : i32
    %c0_i32_1 = arith.constant 0 : i32
    %c0_i32_2 = arith.constant 0 : i32
    return %c0_i32, %c0_i32_0, %c0_i32_1 : i32, i32, i32
  }
  func.func @transform_3(%arg0: i32) -> (i32, i32) {
    %c0_i32 = arith.constant 0 : i32
    %c0_i32_0 = arith.constant 0 : i32
    %c0_i32_1 = arith.constant 0 : i32
    return %c0_i32, %c0_i32_0 : i32, i32
  }
  func.func @transform_4(%arg0: i32) -> (i32, i32) {
    %c0_i32 = arith.constant 0 : i32
    %c0_i32_0 = arith.constant 0 : i32
    return %arg0, %c0_i32 : i32, i32
  }
}

</mosaic_0001>

<bundles_post_ra>
// kernel: disc_ecal_forward.1
= control target key start
LH: loop header
LB: loop body
LE: loop exit
PB: predicated region body
PF: predicated region fallthrough
CT: control target
= control target key end

     0   :  { %9 = vsyncpa [#allocation3], 0  ;;  %s3324_s0 = inlined_call_operand.vmem [shape: f32[12,8], index: 0, kind: input, shape index: {}]   ;;  %s3325_s1 = inlined_call_operand.vmem [shape: f32[12,8,128], index: 1, kind: input, shape index: {}]   ;;  %s3326_s2 = inlined_call_operand.vmem [shape: bf16[8,128,256], index: 2, kind: input, shape index: {}]   ;;  %s3327_s3 = inlined_call_operand.vmem [shape: bf16[256,128], index: 3, kind: input, shape index: {}]   ;;  %s3328_s4 = inlined_call_operand.vmem [shape: f32[8,128], index: 4, kind: output, shape index: {}]  }
   0x1   :  { %s15_s17 = sshll.u32 %s3324_s0, 4  ;;  %s16_s17 = int_to_ptr.vmem [resolvable:$true] %s15_s17 }
   0x2   :  { %s2368_s18 = scalar_lea.vmem %s16_s17, 256  ;;  %p2373_p1 = scmp.lt.s32.totalorder %s16_s17, %s16_s17 }
   0x3   :  { %p2369_p0 = scmp.ne.s32.totalorder %s16_s17, %s2368_s18  ;;  %p2374_p2 = scmp.lt.s32.totalorder %s2368_s18, %s2368_s18 }
   0x5   :  { %p2375_p3 = por %p2374_p2, %p2373_p1 }
   0x7   :  { %p2376_p4 = pnand %p2375_p3, %p2369_p0 }
   0x9   :  { %2379 = shalt.err (!%p2376_p4)
}
   0xa   :  { %s2382_s19 = smov [#allocation2]   ;;  %s2383_s20 = smov 128  }
   0xb   :  { %s2384_s21 = smov 8  }
   0xc   :  { %21 = dma.vmem_to_smem %s16_s17, 256, %s2382_s19, [#allocation3], %s2383_s20, %s2383_s20, %s2384_s21  }
   0xd   :  { %2380 = dma.done.wait [#allocation3], 256  }
   0xe   :  { %2381 = vsyncadd [#allocation3], 4294967040 }
   0xf   :  { %31 = sfence }
  0x10   :  { %v2144_v0 = vld [vmem:[%s3326_s2 + $0xf4] ss:$8 sps:$4 sm:$0xff]   ;;  %v2385_v2 = vmov 0   ;;  %v2148_v3 = vld [vmem:[%s3326_s2 + $0xf0] ss:$8 sps:$4 sm:$0xff]   ;;  %s2458_s23 = sld [smem:[#allocation2 + $0x1]] }
  0x11   :  { %v2146_v1 = vld [vmem:[%s3326_s2 + $0x74] ss:$8 sps:$4 sm:$0xff]   ;;  %301 = vmatprep.mubr.bf16.mxu0 %v2385_v2  ;;  %422 = vmatprep.mubr.bf16.mxu1 %v2385_v2  ;;  %v2149_v4 = vld [vmem:[%s3326_s2 + $0x70] ss:$8 sps:$4 sm:$0xff]   ;;  %v2150_v5 = vld [vmem:[%s3326_s2 + $0xe4] ss:$8 sps:$4 sm:$0xff]  }
  0x12   :  { %269 = vmatprep.subr.bf16.mxu0 %v2144_v0  ;;  %390 = vmatprep.subr.bf16.mxu1 %v2146_v1  ;;  %v2152_v6 = vld [vmem:[%s3326_s2 + $0x64] ss:$8 sps:$4 sm:$0xff]   ;;  %v2154_v7 = vld [vmem:[%s3326_s2 + $0xe0] ss:$8 sps:$4 sm:$0xff]   ;;  %v2156_v9 = vld [vmem:[%s3326_s2 + $0xd4] ss:$8 sps:$4 sm:$0xff]  }
  0x13   :  { %270 = vmatpush1.bf16.msra.mxu0 %v2148_v3  ;;  %391 = vmatpush1.bf16.msra.mxu1 %v2149_v4  ;;  %v2155_v8 = vld [vmem:[%s3326_s2 + $0x60] ss:$8 sps:$4 sm:$0xff]   ;;  %v2158_v10 = vld [vmem:[%s3326_s2 + $0x54] ss:$8 sps:$4 sm:$0xff]   ;;  %v2160_v11 = vld [vmem:[%s3326_s2 + $0xd0] ss:$8 sps:$4 sm:$0xff]  }
  0x14   :  { %271 = vmatprep.subr.bf16.mxu0 %v2150_v5  ;;  %392 = vmatprep.subr.bf16.mxu1 %v2152_v6  ;;  %v2161_v12 = vld [vmem:[%s3326_s2 + $0x50] ss:$8 sps:$4 sm:$0xff]   ;;  %v2162_v13 = vld [vmem:[%s3326_s2 + $0xc4] ss:$8 sps:$4 sm:$0xff]   ;;  %s2460_s0 = sld [smem:[#allocation2 + $0x81]] }
  0x15   :  { %v2164_v14 = vld [vmem:[%s3326_s2 + $0x44] ss:$8 sps:$4 sm:$0xff]   ;;  %v2166_v15 = vld [vmem:[%s3326_s2 + $0xc0] ss:$8 sps:$4 sm:$0xff]   ;;  %s2465_s26 = sld [smem:[#allocation2 + $0x101]]  ;;  %v2545_v35 = vld [vmem:[%s3325_s1 + $0x10] sm:$0xff] }
  0x16   :  { %v2167_v16 = vld [vmem:[%s3326_s2 + $0x40] ss:$8 sps:$4 sm:$0xff]   ;;  %v2168_v17 = vld [vmem:[%s3326_s2 + $0xb4] ss:$8 sps:$4 sm:$0xff]   ;;  %s2476_s7 = sld [smem:[#allocation2 + $0x181]]  ;;  %v123_v26 = vstv %s2458_s23 }
  0x17   :  { %272 = vmatpush1.bf16.msra.mxu0 %v2154_v7  ;;  %393 = vmatpush1.bf16.msra.mxu1 %v2155_v8  ;;  %v2170_v18 = vld [vmem:[%s3326_s2 + $0x34] ss:$8 sps:$4 sm:$0xff]   ;;  %s2478_s8 = sld [smem:[#allocation2 + $0x201]]  ;;  %v2172_v19 = vld [vmem:[%s3326_s2 + $0xb0] ss:$8 sps:$4 sm:$0xff]   ;;  %v2535_v33 = vld [vmem:[%s3325_s1] sm:$0xff] }
  0x18   :  { %273 = vmatprep.subr.bf16.mxu0 %v2156_v9  ;;  %394 = vmatprep.subr.bf16.mxu1 %v2158_v10  ;;  %v2173_v20 = vld [vmem:[%s3326_s2 + $0x30] ss:$8 sps:$4 sm:$0xff]   ;;  %s2486_s13 = sld [smem:[#allocation2 + $0x281]]  ;;  %v2174_v21 = vld [vmem:[%s3326_s2 + $0xa4] ss:$8 sps:$4 sm:$0xff]   ;;  %v124_v39 = vmul.f32 %v123_v26, %v2535_v33 }
  0x19   :  { %s2491_s16 = sld [smem:[#allocation2 + $0x301]]  ;;  %v2176_v22 = vld [vmem:[%s3326_s2 + $0x24] ss:$8 sps:$4 sm:$0xff]   ;;  %v2178_v23 = vld [vmem:[%s3326_s2 + $0xa0] ss:$8 sps:$4 sm:$0xff]   ;;  %v2556_v38 = vld [vmem:[%s3325_s1 + $0x18] sm:$0xff] }
  0x1a   :  { %s2496_s19 = sld [smem:[#allocation2 + $0x381]]  ;;  %v2179_v24 = vld [vmem:[%s3326_s2 + $0x20] ss:$8 sps:$4 sm:$0xff]   ;;  %v2180_v25 = vld [vmem:[%s3326_s2 + $0x94] ss:$8 sps:$4 sm:$0xff]   ;;  %v126_v28 = vstv %s2460_s0 }
  0x1b   :  { %274 = vmatpush1.bf16.msra.mxu0 %v2160_v11  ;;  %395 = vmatpush1.bf16.msra.mxu1 %v2161_v12  ;;  %s2501_s22 = sld [smem:[#allocation2 + $0x401]]  ;;  %v2182_v27 = vld [vmem:[%s3326_s2 + $0x14] ss:$8 sps:$4 sm:$0xff]   ;;  %v2184_v29 = vld [vmem:[%s3326_s2 + $0x90] ss:$8 sps:$4 sm:$0xff]   ;;  %v130_v31 = vstv %s2465_s26  ;;  %v2540_v34 = vld [vmem:[%s3325_s1 + $0x8] sm:$0xff] }
  0x1c   :  { %275 = vmatprep.subr.bf16.mxu0 %v2162_v13  ;;  %396 = vmatprep.subr.bf16.mxu1 %v2164_v14  ;;  %s2506_s27 = sld [smem:[#allocation2 + $0x481]]  ;;  %v2185_v30 = vld [vmem:[%s3326_s2 + $0x10] ss:$8 sps:$4 sm:$0xff]   ;;  %v2186_v32 = vld [vmem:[%s3326_s2 + $0x84] ss:$8 sps:$4 sm:$0xff]   ;;  %v134_v36 = vstv %s2476_s7  ;;  %v127_v40 = vmul.f32 %v2540_v34, %v126_v28  ;;  %v131_v41 = vmul.f32 %v2545_v35, %v130_v31 }
  0x1d   :  { %s2512_s30 = sld [smem:[#allocation2 + $0x501]]  ;;  %v2188_v37 = vld [vmem:[%s3326_s2 + $0x4] ss:$8 sps:$4 sm:$0xff]   ;;  %v2190_v42 = vld [vmem:[%s3326_s2 + $0x80] ss:$8 sps:$4 sm:$0xff]   ;;  %v138_v45 = vstv %s2478_s8  ;;  %v135_v49 = vmul.f32 %v2556_v38, %v134_v36  ;;  %v2598_v53 = vld [vmem:[%s3325_s1 + $0x30] sm:$0xff] }
  0x1e   :  { %s2518_s9 = sld [smem:[#allocation2]]  ;;  %v2191_v43 = vld [vmem:[%s3326_s2] ss:$8 sps:$4 sm:$0xff]   ;;  %v2194_v46 = vld [vmem:[%s3326_s2 + $0x174] ss:$8 sps:$4 sm:$0xff]   ;;  %v128_v48 = vadd.f32 %v127_v40, %v124_v39  ;;  %v142_v50 = vstv %s2486_s13 }
  0x1f   :  { %276 = vmatpush1.bf16.msra.mxu0 %v2166_v15  ;;  %397 = vmatpush1.bf16.msra.mxu1 %v2167_v16  ;;  %s2530_s17 = sld [smem:[#allocation2 + $0x581]]  ;;  %v2572_v44 = vld [vmem:[%s3325_s1 + $0x20] sm:$0xff]  ;;  %v2197_v47 = vld [vmem:[%s3326_s2 + $0x1f4] ss:$8 sps:$4 sm:$0xff]   ;;  %v2590_v51 = vld [vmem:[%s3325_s1 + $0x28] sm:$0xff]  ;;  %v146_v56 = vstv %s2491_s16 }
  0x20   :  { %277 = vmatprep.subr.bf16.mxu0 %v2168_v17  ;;  %398 = vmatprep.subr.bf16.mxu1 %v2170_v18  ;;  %s2548_s25 = sld [smem:[#allocation2 + $0x80]]  ;;  %v132_v54 = vadd.f32 %v131_v41, %v128_v48  ;;  %v139_v55 = vmul.f32 %v2572_v44, %v138_v45  ;;  %v150_v58 = vstv %s2496_s19  ;;  %v143_v62 = vmul.f32 %v2590_v51, %v142_v50  ;;  %v2616_v1 = vld [vmem:[%s3325_s1 + $0x38] sm:$0xff]  ;;  %v2626_v6 = vld [vmem:[%s3325_s1 + $0x40] sm:$0xff]  ;;  %v2643_v17 = vld [vmem:[%s3325_s1 + $0x48] sm:$0xff] }
  0x21   :  { %s2561_s7 = sld [smem:[#allocation2 + $0x100]]  ;;  %v154_v59 = vstv %s2501_s22  ;;  %v147_v3 = vmul.f32 %v2598_v53, %v146_v56  ;;  %v151_v14 = vmul.f32 %v2616_v1, %v150_v58 }
  0x22   :  { %s2575_s0 = sld [smem:[#allocation2 + $0x180]]  ;;  %v136_v61 = vadd.f32 %v135_v49, %v132_v54  ;;  %v158_v11 = vstv %s2506_s27  ;;  %v155_v18 = vmul.f32 %v2626_v6, %v154_v59 }
  0x23   :  { %278 = vmatpush1.bf16.msra.mxu0 %v2172_v19  ;;  %399 = vmatpush1.bf16.msra.mxu1 %v2173_v20  ;;  %s2585_s24 = sld [smem:[#allocation2 + $0x200]]  ;;  %v162_v19 = vstv %s2512_s30 }
  0x24   :  { %279 = vmatprep.subr.bf16.mxu0 %v2174_v21  ;;  %400 = vmatprep.subr.bf16.mxu1 %v2176_v22  ;;  %v35_v52 = vstv %s2518_s9  ;;  %s2593_s29 = sld [smem:[#allocation2 + $0x280]]  ;;  %v140_v7 = vadd.f32 %v139_v55, %v136_v61  ;;  %v2653_v21 = vld [vmem:[%s3325_s1 + $0x50] sm:$0xff] }
  0x25   :  { %v36_v57 = vmul.f32 %v35_v52, %v2535_v33  ;;  %s2603_s13 = sld [smem:[#allocation2 + $0x300]]  ;;  %v166_v26 = vstv %s2530_s17 }
  0x26   :  { %v40_v60 = vstv %s2548_s25  ;;  %s2608_s9 = sld [smem:[#allocation2 + $0x380]]  ;;  %v144_v13 = vadd.f32 %v143_v62, %v140_v7 }
  0x27   :  { %280 = vmatpush1.bf16.msra.mxu0 %v2178_v23  ;;  %401 = vmatpush1.bf16.msra.mxu1 %v2179_v24  ;;  %v41_v63 = vmul.f32 %v2540_v34, %v40_v60  ;;  %v46_v0 = vstv %s2561_s7  ;;  %s2621_s19 = sld [smem:[#allocation2 + $0x400]] }
  0x28   :  { %281 = vmatprep.subr.bf16.mxu0 %v2180_v25  ;;  %402 = vmatprep.subr.bf16.mxu1 %v2182_v27  ;;  %v47_v4 = vmul.f32 %v2545_v35, %v46_v0  ;;  %v52_v5 = vstv %s2575_s0  ;;  %s2630_s7 = sld [smem:[#allocation2 + $0x480]]  ;;  %v148_v22 = vadd.f32 %v147_v3, %v144_v13  ;;  %v2661_v27 = vld [vmem:[%s3325_s1 + $0x58] sm:$0xff] }
  0x29   :  { %v42_v8 = vadd.f32 %v41_v63, %v36_v57  ;;  %v53_v9 = vmul.f32 %v2556_v38, %v52_v5  ;;  %v58_v10 = vstv %s2585_s24  ;;  %s2634_s11 = sld [smem:[#allocation2 + $0x500]] }
  0x2a   :  { %v64_v12 = vstv %s2593_s29  ;;  %v59_v16 = vmul.f32 %v2572_v44, %v58_v10  ;;  %s2638_s12 = sld [smem:[#allocation2 + $0x2]]  ;;  %v152_v28 = vadd.f32 %v151_v14, %v148_v22  ;;  %v2192_v14 = vld [vmem:[%s3326_s2 + $0x170] ss:$8 sps:$4 sm:$0xff]  }
  0x2b   :  { %282 = vmatpush1.bf16.msra.mxu0 %v2184_v29  ;;  %403 = vmatpush1.bf16.msra.mxu1 %v2185_v30  ;;  %v48_v15 = vadd.f32 %v47_v4, %v42_v8  ;;  %v70_v20 = vstv %s2603_s13  ;;  %s2648_s27 = sld [smem:[#allocation2 + $0x580]]  ;;  %v65_v24 = vmul.f32 %v2590_v51, %v64_v12  ;;  %v159_v29 = vmul.f32 %v2643_v17, %v158_v11 }
  0x2c   :  { %283 = vmatprep.subr.bf16.mxu0 %v2186_v32  ;;  %404 = vmatprep.subr.bf16.mxu1 %v2188_v37  ;;  %v76_v25 = vstv %s2608_s9  ;;  %s1839_s18 = sld [smem:[#allocation2 + $0x82]]  ;;  %v71_v31 = vmul.f32 %v2598_v53, %v70_v20  ;;  %v163_v32 = vmul.f32 %v2653_v21, %v162_v19  ;;  %v156_v39 = vadd.f32 %v155_v18, %v152_v28  ;;  %v2200_v19 = vld [vmem:[%s3326_s2 + $0x164] ss:$8 sps:$4 sm:$0xff]  }
  0x2d   :  { %v54_v23 = vadd.f32 %v53_v9, %v48_v15  ;;  %s1840_s21 = sld [smem:[#allocation2 + $0x102]]  ;;  %v77_v36 = vmul.f32 %v2616_v1, %v76_v25  ;;  %v82_v37 = vstv %s2621_s19 }
  0x2e   :  { %v88_v41 = vstv %s2630_s7  ;;  %s1841_s17 = sld [smem:[#allocation2 + $0x182]]  ;;  %v160_v45 = vadd.f32 %v159_v29, %v156_v39 }
  0x2f   :  { %284 = vmatpush1.bf16.msra.mxu0 %v2190_v42  ;;  %405 = vmatpush1.bf16.msra.mxu1 %v2191_v43  ;;  %v60_v30 = vadd.f32 %v59_v16, %v54_v23  ;;  %v167_v43 = vmul.f32 %v2661_v27, %v166_v26  ;;  %s1842_s26 = sld [smem:[#allocation2 + $0x202]]  ;;  %v89_v49 = vmul.f32 %v2643_v17, %v88_v41  ;;  %v94_v50 = vstv %s2634_s11  ;;  %v2195_v41 = vld [vmem:[%s3326_s2 + $0x1f0] ss:$8 sps:$4 sm:$0xff]  }
  0x30   :  { %578 = vmatprep.subr.bf16.mxu0 %v2194_v46  ;;  %768 = vmatprep.subr.bf16.mxu1 %v2197_v47  ;;  %v432_v42 = vstv %s2638_s12  ;;  %v83_v47 = vmul.f32 %v2626_v6, %v82_v37  ;;  %v164_v55 = vadd.f32 %v163_v32, %v160_v45  ;;  %s1843_s24 = sld [smem:[#allocation2 + $0x282]]  ;;  %v95_v62 = vmul.f32 %v2653_v21, %v94_v50  ;;  %v2206_v37 = vld [vmem:[%s3326_s2 + $0x154] ss:$8 sps:$4 sm:$0xff]   ;;  %v2204_v45 = vld [vmem:[%s3326_s2 + $0x150] ss:$8 sps:$4 sm:$0xff]  }
  0x31   :  { %v66_v40 = vadd.f32 %v65_v24, %v60_v30  ;;  %v433_v48 = vmul.f32 %v432_v42, %v2535_v33  ;;  %v100_v52 = vstv %s2648_s27  ;;  %s2679_s8 = sld [smem:[#allocation2 + $0x302]]  ;;  %v2198_v30 = vld [vmem:[%s3326_s2 + $0x160] ss:$8 sps:$4 sm:$0xff]  }
  0x32   :  { %v435_v54 = vstv %s1839_s18  ;;  %v168_v60 = vadd.f32 %v167_v43, %v164_v55  ;;  %v101_v0 = vmul.f32 %v2661_v27, %v100_v52  ;;  %s1845_s28 = sld [smem:[#allocation2 + $0x382]]  ;;  %v2203_v43 = vld [vmem:[%s3326_s2 + $0x1e4] ss:$8 sps:$4 sm:$0xff]   ;;  %v2201_v52 = vld [vmem:[%s3326_s2 + $0x1e0] ss:$8 sps:$4 sm:$0xff]  }
  0x33   :  { %v72_v46 = vadd.f32 %v71_v31, %v66_v40  ;;  %v436_v57 = vmul.f32 %v2540_v34, %v435_v54  ;;  %v439_v58 = vstv %s1840_s21  ;;  %s2683_s29 = sld [smem:[#allocation2 + $0x402]]  ;;  %v2212_v54 = vld [vmem:[%s3326_s2 + $0x144] ss:$8 sps:$4 sm:$0xff]  }
  0x34   :  { %v440_v59 = vmul.f32 %v2545_v35, %v439_v58  ;;  %v443_v3 = vstv %s1841_s17  ;;  %v169_v4 = vmul.f32 0.2, %v168_v60  ;;  %s2685_s5 = sld [smem:[#allocation2 + $0x482]] }
  0x35   :  { %v78_v56 = vadd.f32 %v77_v36, %v72_v46  ;;  %v437_v63 = vadd.f32 %v436_v57, %v433_v48  ;;  %v444_v8 = vmul.f32 %v2556_v38, %v443_v3  ;;  %v447_v9 = vstv %s1842_s26  ;;  %s2688_s6 = sld [smem:[#allocation2 + $0x502]] }
  0x36   :  { %v170_v10 = vmax.f32 %v168_v60, %v169_v4  ;;  %v448_v13 = vmul.f32 %v2572_v44, %v447_v9  ;;  %v451_v15 = vstv %s1843_s24  ;;  %s2693_s16 = sld [smem:[#allocation2 + $0x582]]  ;;  %v2218_v9 = vld [vmem:[%s3326_s2 + $0x134] ss:$8 sps:$4 sm:$0xff]  }
  0x37   :  { %v84_v61 = vadd.f32 %v83_v47, %v78_v56  ;;  %v441_v7 = vadd.f32 %v440_v59, %v437_v63  ;;  %v452_v22 = vmul.f32 %v2590_v51, %v451_v15  ;;  %s2699_s22 = sld [smem:[#allocation2 + $0x3]]  ;;  %v455_v23 = vstv %s2679_s8  ;;  %v2209_v63 = vld [vmem:[%s3326_s2 + $0x1d4] ss:$8 sps:$4 sm:$0xff]  }
  0x38   :  { %v171_v16 = vpack.c.bf16 %v170_v10, %v170_v10  ;;  %v459_v24 = vstv %s1845_s28  ;;  %s2702_s25 = sld [smem:[#allocation2 + $0x83]]  ;;  %v456_v28 = vmul.f32 %v2598_v53, %v455_v23  ;;  %v2224_v23 = vld [vmem:[%s3326_s2 + $0x124] ss:$8 sps:$4 sm:$0xff]  }
  0x39   :  { %v90_v5 = vadd.f32 %v89_v49, %v84_v61  ;;  %v445_v12 = vadd.f32 %v444_v8, %v441_v7  ;;  %v460_v29 = vmul.f32 %v2616_v1, %v459_v24  ;;  %s2706_s7 = sld [smem:[#allocation2 + $0x103]]  ;;  %v463_v31 = vstv %s2683_s29  ;;  %v2210_v7 = vld [vmem:[%s3326_s2 + $0x140] ss:$8 sps:$4 sm:$0xff]  }
  0x3a   :  { %302 = vmatmul.mubr.bf16.vlgmr.msra.gmra.mxu0 %v171_v16  ;;  %v467_v32 = vstv %s2685_s5  ;;  %s2714_s14 = sld [smem:[#allocation2 + $0x183]]  ;;  %v464_v40 = vmul.f32 %v2626_v6, %v463_v31  ;;  %v2215_v16 = vld [vmem:[%s3326_s2 + $0x1c4] ss:$8 sps:$4 sm:$0xff]  }
  0x3b   :  { %v96_v11 = vadd.f32 %v95_v62, %v90_v5  ;;  %v449_v20 = vadd.f32 %v448_v13, %v445_v12  ;;  %579 = vmatpush1.bf16.msra.mxu0 %v2192_v14  ;;  %610 = vmatprep.mubr.bf16.mxu0 %v2385_v2  ;;  %s2720_s15 = sld [smem:[#allocation2 + $0x203]]  ;;  %v468_v47 = vmul.f32 %v2643_v17, %v467_v32  ;;  %v471_v48 = vstv %s2688_s6  ;;  %v2207_v12 = vld [vmem:[%s3326_s2 + $0x1d0] ss:$8 sps:$4 sm:$0xff]  }
  0x3c   :  { %580 = vmatprep.subr.bf16.mxu0 %v2200_v19  ;;  %s2725_s20 = sld [smem:[#allocation2 + $0x283]]  ;;  %v472_v59 = vmul.f32 %v2653_v21, %v471_v48  ;;  %v475_v60 = vstv %s2693_s16 }
  0x3d   :  { %v102_v18 = vadd.f32 %v101_v0, %v96_v11  ;;  %v453_v26 = vadd.f32 %v452_v22, %v449_v20  ;;  %s2735_s24 = sld [smem:[#allocation2 + $0x303]]  ;;  %v622_v49 = vstv %s2699_s22  ;;  %v476_v14 = vmul.f32 %v2661_v27, %v475_v60  ;;  %v2216_v20 = vld [vmem:[%s3326_s2 + $0x130] ss:$8 sps:$4 sm:$0xff]  }
  0x3e   :  { %v625_v50 = vstv %s2702_s25  ;;  %s2739_s8 = sld [smem:[#allocation2 + $0x383]]  ;;  %v623_v56 = vmul.f32 %v622_v49, %v2535_v33 }
  0x3f   :  { %v103_v25 = vmul.f32 0.2, %v102_v18  ;;  %v457_v39 = vadd.f32 %v456_v28, %v453_v26  ;;  %581 = vmatpush1.bf16.msra.mxu0 %v2198_v30  ;;  %v626_v57 = vmul.f32 %v2540_v34, %v625_v50  ;;  %v629_v58 = vstv %s2706_s7  ;;  %s2755_s6 = sld [smem:[#allocation2 + $0x403]]  ;;  %v2213_v26 = vld [vmem:[%s3326_s2 + $0x1c0] ss:$8 sps:$4 sm:$0xff]  }
  0x40   :  { %582 = vmatprep.subr.bf16.mxu0 %v2206_v37  ;;  %v630_v61 = vmul.f32 %v2545_v35, %v629_v58  ;;  %v633_v62 = vstv %s2714_s14  ;;  %s2762_s19 = sld [smem:[#allocation2 + $0x483]]  ;;  %v2221_v30 = vld [vmem:[%s3326_s2 + $0x1b4] ss:$8 sps:$4 sm:$0xff]   ;;  %v2219_v37 = vld [vmem:[%s3326_s2 + $0x1b0] ss:$8 sps:$4 sm:$0xff]  }
  0x41   :  { %v104_v36 = vmax.f32 %v102_v18, %v103_v25  ;;  %v461_v46 = vadd.f32 %v460_v29, %v457_v39  ;;  %v627_v3 = vadd.f32 %v626_v57, %v623_v56  ;;  %v634_v4 = vmul.f32 %v2556_v38, %v633_v62  ;;  %s2768_s25 = sld [smem:[#allocation2 + $0x503]]  ;;  %v2222_v39 = vld [vmem:[%s3326_s2 + $0x120] ss:$8 sps:$4 sm:$0xff]   ;;  %v2227_v50 = vld [vmem:[%s3326_s2 + $0x1a4] ss:$8 sps:$4 sm:$0xff]  }
  0x42   :  { %v637_v5 = vstv %s2720_s15  ;;  %v641_v8 = vstv %s2725_s20  ;;  %s2774_s12 = sld [smem:[#allocation2 + $0x4]] }
  0x43   :  { %v105_v42 = vpack.c.bf16 %v104_v36, %v104_v36  ;;  %v465_v55 = vadd.f32 %v464_v40, %v461_v46  ;;  %583 = vmatpush1.bf16.msra.mxu0 %v2204_v45  ;;  %v631_v10 = vadd.f32 %v630_v61, %v627_v3  ;;  %v638_v11 = vmul.f32 %v2572_v44, %v637_v5  ;;  %s2781_s27 = sld [smem:[#allocation2 + $0x84]]  ;;  %v2233_v3 = vld [vmem:[%s3326_s2 + $0x194] ss:$8 sps:$4 sm:$0xff]  }
  0x44   :  { %584 = vmatprep.subr.bf16.mxu0 %v2212_v54  ;;  %v645_v15 = vstv %s2735_s24  ;;  %v642_v19 = vmul.f32 %v2590_v51, %v641_v8  ;;  %v649_v22 = vstv %s2739_s8  ;;  %s2791_s30 = sld [smem:[#allocation2 + $0x583]] }
  0x45   :  { %423 = vmatmul.mubr.bf16.vlgmr.msra.gmra.mxu1 %v105_v42  ;;  %v469_v0 = vadd.f32 %v468_v47, %v465_v55  ;;  %v635_v18 = vadd.f32 %v634_v4, %v631_v10  ;;  %v646_v25 = vmul.f32 %v2598_v53, %v645_v15  ;;  %v653_v29 = vstv %s2755_s6  ;;  %s2801_s8 = sld [smem:[#allocation2 + $0x104]] }
  0x46   :  { %769 = vmatpush1.bf16.msra.mxu1 %v2195_v41  ;;  %800 = vmatprep.mubr.bf16.mxu1 %v2385_v2  ;;  %v650_v32 = vmul.f32 %v2616_v1, %v649_v22  ;;  %v657_v40 = vstv %s2762_s19  ;;  %v654_v46 = vmul.f32 %v2626_v6, %v653_v29  ;;  %s2822_s22 = sld [smem:[#allocation2 + $0x184]]  ;;  %v2239_v22 = vld [vmem:[%s3326_s2 + $0x184] ss:$8 sps:$4 sm:$0xff]  }
  0x47   :  { %770 = vmatprep.subr.bf16.mxu1 %v2203_v43  ;;  %v473_v13 = vadd.f32 %v472_v59, %v469_v0  ;;  %585 = vmatpush1.bf16.msra.mxu0 %v2210_v7  ;;  %v639_v24 = vadd.f32 %v638_v11, %v635_v18  ;;  %v2230_v43 = vld [vmem:[%s3326_s2 + $0x114] ss:$8 sps:$4 sm:$0xff]   ;;  %v661_v49 = vstv %s2768_s25  ;;  %s2825_s19 = sld [smem:[#allocation2 + $0x204]]  ;;  %v658_v55 = vmul.f32 %v2643_v17, %v657_v40  ;;  %v2236_v59 = vld [vmem:[%s3326_s2 + $0x104] ss:$8 sps:$4 sm:$0xff]  }
  0x48   :  { %586 = vmatprep.subr.bf16.mxu0 %v2218_v9  ;;  %v812_v36 = vstv %s2774_s12  ;;  %s2834_s23 = sld [smem:[#allocation2 + $0x284]]  ;;  %v662_v61 = vmul.f32 %v2653_v21, %v661_v49  ;;  %v2234_v9 = vld [vmem:[%s3326_s2 + $0x100] ss:$8 sps:$4 sm:$0xff]   ;;  %v2243_v49 = vld [vmem:[%s3326_s2 + $0x2f0] ss:$8 sps:$4 sm:$0xff]  }
  0x49   :  { %v477_v28 = vadd.f32 %v476_v14, %v473_v13  ;;  %v643_v31 = vadd.f32 %v642_v19, %v639_v24  ;;  %v813_v41 = vmul.f32 %v812_v36, %v2535_v33  ;;  %v815_v42 = vstv %s2781_s27  ;;  %s2838_s25 = sld [smem:[#allocation2 + $0x304]]  ;;  %v2242_v13 = vld [vmem:[%s3326_s2 + $0x274] ss:$8 sps:$4 sm:$0xff]   ;;  %v2237_v36 = vld [vmem:[%s3326_s2 + $0x180] ss:$8 sps:$4 sm:$0xff]  }
  0x4a   :  { %771 = vmatpush1.bf16.msra.mxu1 %v2201_v52  ;;  %v816_v47 = vmul.f32 %v2540_v34, %v815_v42  ;;  %v2228_v52 = vld [vmem:[%s3326_s2 + $0x110] ss:$8 sps:$4 sm:$0xff]   ;;  %v665_v57 = vstv %s2791_s30  ;;  %s2845_s0 = sld [smem:[#allocation2 + $0x384]]  ;;  %v2245_v42 = vld [vmem:[%s3326_s2 + $0x2f4] ss:$8 sps:$4 sm:$0xff]  }
  0x4b   :  { %772 = vmatprep.subr.bf16.mxu1 %v2209_v63  ;;  %587 = vmatpush1.bf16.msra.mxu0 %v2216_v20  ;;  %v647_v45 = vadd.f32 %v646_v25, %v643_v31  ;;  %v478_v48 = vmul.f32 0.2, %v477_v28  ;;  %v819_v58 = vstv %s2801_s8  ;;  %v2225_v63 = vld [vmem:[%s3326_s2 + $0x1a0] ss:$8 sps:$4 sm:$0xff]   ;;  %s2850_s30 = sld [smem:[#allocation2 + $0x404]]  ;;  %v666_v5 = vmul.f32 %v2661_v27, %v665_v57 }
  0x4c   :  { %588 = vmatprep.subr.bf16.mxu0 %v2224_v23  ;;  %v817_v56 = vadd.f32 %v816_v47, %v813_v41  ;;  %v820_v62 = vmul.f32 %v2545_v35, %v819_v58  ;;  %v823_v8 = vstv %s2822_s22  ;;  %s2857_s26 = sld [smem:[#allocation2 + $0x484]] }
  0x4d   :  { %v651_v54 = vadd.f32 %v650_v32, %v647_v45  ;;  %v479_v0 = vmax.f32 %v477_v28, %v478_v48  ;;  %v824_v10 = vmul.f32 %v2556_v38, %v823_v8  ;;  %v827_v11 = vstv %s2825_s19  ;;  %s2864_s28 = sld [smem:[#allocation2 + $0x504]]  ;;  %v2248_v28 = vld [vmem:[%s3326_s2 + $0x264] ss:$8 sps:$4 sm:$0xff]  }
  0x4e   :  { %773 = vmatpush1.bf16.msra.mxu1 %v2207_v12  ;;  %v821_v7 = vadd.f32 %v820_v62, %v817_v56  ;;  %v828_v14 = vmul.f32 %v2572_v44, %v827_v11  ;;  %v831_v15 = vstv %s2834_s23  ;;  %s2871_s13 = sld [smem:[#allocation2 + $0x584]] }
  0x4f   :  { %774 = vmatprep.subr.bf16.mxu1 %v2215_v16  ;;  %589 = vmatpush1.bf16.msra.mxu0 %v2222_v39  ;;  %v655_v60 = vadd.f32 %v654_v46, %v651_v54  ;;  %v2231_v16 = vld [vmem:[%s3326_s2 + $0x190] ss:$8 sps:$4 sm:$0xff]   ;;  %v832_v19 = vmul.f32 %v2590_v51, %v831_v15  ;;  %v835_v20 = vstv %s2838_s25  ;;  %s2878_s6 = sld [smem:[#allocation2 + $0x5]]  ;;  %v480_v23 = vpack.c.bf16 %v479_v0, %v479_v0 }
  0x50   :  { %590 = vmatprep.subr.bf16.mxu0 %v2230_v43  ;;  %v825_v18 = vadd.f32 %v824_v10, %v821_v7  ;;  %v839_v25 = vstv %s2845_s0  ;;  %s2884_s19 = sld [smem:[#allocation2 + $0x85]]  ;;  %v2246_v43 = vld [vmem:[%s3326_s2 + $0x260] ss:$8 sps:$4 sm:$0xff]   ;;  %v2255_v15 = vld [vmem:[%s3326_s2 + $0x2d0] ss:$8 sps:$4 sm:$0xff]  }
  0x51   :  { %v659_v4 = vadd.f32 %v658_v55, %v655_v60  ;;  %s2893_s23 = sld [smem:[#allocation2 + $0x105]]  ;;  %v843_v32 = vstv %s2850_s30  ;;  %v840_v39 = vmul.f32 %v2616_v1, %v839_v25  ;;  %v2251_v60 = vld [vmem:[%s3326_s2 + $0x2e4] ss:$8 sps:$4 sm:$0xff]  }
  0x52   :  { %775 = vmatpush1.bf16.msra.mxu1 %v2213_v26  ;;  %v2240_v26 = vld [vmem:[%s3326_s2 + $0x270] ss:$8 sps:$4 sm:$0xff]   ;;  %v829_v29 = vadd.f32 %v828_v14, %v825_v18  ;;  %s2896_s25 = sld [smem:[#allocation2 + $0x185]]  ;;  %v847_v40 = vstv %s2857_s26  ;;  %v844_v46 = vmul.f32 %v2626_v6, %v843_v32 }
  0x53   :  { %776 = vmatprep.subr.bf16.mxu1 %v2221_v30  ;;  %591 = vmatpush1.bf16.msra.mxu0 %v2228_v52  ;;  %v663_v12 = vadd.f32 %v662_v61, %v659_v4  ;;  %v836_v30 = vmul.f32 %v2598_v53, %v835_v20  ;;  %s2903_s0 = sld [smem:[#allocation2 + $0x205]]  ;;  %v848_v52 = vmul.f32 %v2643_v17, %v847_v40  ;;  %v851_v57 = vstv %s2864_s28 }
  0x54   :  { %592 = vmatprep.subr.bf16.mxu0 %v2236_v59  ;;  %s2908_s30 = sld [smem:[#allocation2 + $0x285]] }
  0x55   :  { %v667_v24 = vadd.f32 %v666_v5, %v663_v12  ;;  %v1002_v47 = vstv %s2878_s6  ;;  %s2916_s26 = sld [smem:[#allocation2 + $0x305]]  ;;  %v852_v5 = vmul.f32 %v2653_v21, %v851_v57  ;;  %v2257_v12 = vld [vmem:[%s3326_s2 + $0x2d4] ss:$8 sps:$4 sm:$0xff]   ;;  %v2276_v57 = vld [vmem:[%s3326_s2 + $0x210] ss:$8 sps:$4 sm:$0xff]  }
  0x56   :  { %777 = vmatpush1.bf16.msra.mxu1 %v2219_v37  ;;  %v833_v37 = vadd.f32 %v832_v19, %v829_v29  ;;  %v1003_v54 = vmul.f32 %v1002_v47, %v2535_v33  ;;  %v1005_v55 = vstv %s2884_s19  ;;  %s2927_s9 = sld [smem:[#allocation2 + $0x385]]  ;;  %v2263_v19 = vld [vmem:[%s3326_s2 + $0x2c4] ss:$8 sps:$4 sm:$0xff]   ;;  %v2267_v47 = vld [vmem:[%s3326_s2 + $0x2b0] ss:$8 sps:$4 sm:$0xff]  }
  0x57   :  { %778 = vmatprep.subr.bf16.mxu1 %v2227_v50  ;;  %593 = vmatpush1.bf16.msra.mxu0 %v2234_v9  ;;  %v668_v31 = vmul.f32 0.2, %v667_v24  ;;  %v2254_v50 = vld [vmem:[%s3326_s2 + $0x254] ss:$8 sps:$4 sm:$0xff]   ;;  %v1006_v58 = vmul.f32 %v2540_v34, %v1005_v55  ;;  %v1009_v59 = vstv %s2893_s23  ;;  %s2937_s16 = sld [smem:[#allocation2 + $0x405]]  ;;  %v855_v9 = vstv %s2871_s13 }
  0x58   :  { %958 = vmatprep.subr.bf16.mxu0 %v2242_v13  ;;  %v837_v45 = vadd.f32 %v836_v30, %v833_v37  ;;  %v1010_v61 = vmul.f32 %v2545_v35, %v1009_v59  ;;  %v1013_v62 = vstv %s2896_s25  ;;  %s2944_s28 = sld [smem:[#allocation2 + $0x485]]  ;;  %v2260_v35 = vld [vmem:[%s3326_s2 + $0x244] ss:$8 sps:$4 sm:$0xff]   ;;  %v2258_v13 = vld [vmem:[%s3326_s2 + $0x240] ss:$8 sps:$4 sm:$0xff]  }
  0x59   :  { %v669_v41 = vmax.f32 %v667_v24, %v668_v31  ;;  %v1007_v34 = vadd.f32 %v1006_v58, %v1003_v54  ;;  %v1017_v4 = vstv %s2903_s0  ;;  %s2951_s12 = sld [smem:[#allocation2 + $0x505]]  ;;  %v2272_v29 = vld [vmem:[%s3326_s2 + $0x224] ss:$8 sps:$4 sm:$0xff]  }
  0x5a   :  { %779 = vmatpush1.bf16.msra.mxu1 %v2225_v63  ;;  %611 = vmatmul.mubr.bf16.vlgmr.msra.gmra.mxu0 %v480_v23  ;;  %v841_v56 = vadd.f32 %v840_v39, %v837_v45  ;;  %v2252_v63 = vld [vmem:[%s3326_s2 + $0x250] ss:$8 sps:$4 sm:$0xff]   ;;  %v1021_v7 = vstv %s2908_s30  ;;  %v1018_v11 = vmul.f32 %v2572_v44, %v1017_v4  ;;  %s2959_s25 = sld [smem:[#allocation2 + $0x6]]  ;;  %v2266_v44 = vld [vmem:[%s3326_s2 + $0x234] ss:$8 sps:$4 sm:$0xff]  }
  0x5b   :  { %780 = vmatprep.subr.bf16.mxu1 %v2233_v3  ;;  %959 = vmatpush1.bf16.msra.mxu0 %v2240_v26  ;;  %v670_v48 = vpack.c.bf16 %v669_v41, %v669_v41  ;;  %v1014_v3 = vmul.f32 %v2556_v38, %v1013_v62  ;;  %v2249_v38 = vld [vmem:[%s3326_s2 + $0x2e0] ss:$8 sps:$4 sm:$0xff]   ;;  %v1011_v10 = vadd.f32 %v1010_v61, %v1007_v34  ;;  %v1025_v14 = vstv %s2916_s26  ;;  %s2975_s17 = sld [smem:[#allocation2 + $0x585]] }
  0x5c   :  { %990 = vmatprep.mubr.bf16.mxu0 %v2385_v2  ;;  %960 = vmatprep.subr.bf16.mxu0 %v2248_v28  ;;  %v845_v0 = vadd.f32 %v844_v46, %v841_v56  ;;  %v1022_v18 = vmul.f32 %v2590_v51, %v1021_v7  ;;  %v1029_v23 = vstv %s2927_s9  ;;  %s2982_s26 = sld [smem:[#allocation2 + $0x86]]  ;;  %v2264_v51 = vld [vmem:[%s3326_s2 + $0x230] ss:$8 sps:$4 sm:$0xff]   ;;  %v1026_v25 = vmul.f32 %v2598_v53, %v1025_v14  ;;  %v2261_v28 = vld [vmem:[%s3326_s2 + $0x2c0] ss:$8 sps:$4 sm:$0xff]  }
  0x5d   :  { %s2988_s10 = sld [smem:[#allocation2 + $0x106]]  ;;  %v1033_v26 = vstv %s2937_s16  ;;  %v1030_v31 = vmul.f32 %v2616_v1, %v1029_v23  ;;  %v2270_v1 = vld [vmem:[%s3326_s2 + $0x220] ss:$8 sps:$4 sm:$0xff]  }
  0x5e   :  { %781 = vmatpush1.bf16.msra.mxu1 %v2231_v16  ;;  %v849_v8 = vadd.f32 %v848_v52, %v845_v0  ;;  %v1015_v16 = vadd.f32 %v1014_v3, %v1011_v10  ;;  %s2991_s6 = sld [smem:[#allocation2 + $0x186]]  ;;  %v1037_v53 = vstv %s2944_s28  ;;  %v1034_v41 = vmul.f32 %v2626_v6, %v1033_v26  ;;  %v2273_v34 = vld [vmem:[%s3326_s2 + $0x2a0] ss:$8 sps:$4 sm:$0xff]   ;;  %v3121_v26 = vld [vmem:[%s3325_s1 + $0x38] sm:$0xff] }
  0x5f   :  { %782 = vmatprep.subr.bf16.mxu1 %v2239_v22  ;;  %961 = vmatpush1.bf16.msra.mxu0 %v2246_v43  ;;  %v856_v22 = vmul.f32 %v2661_v27, %v855_v9  ;;  %s3002_s11 = sld [smem:[#allocation2 + $0x206]]  ;;  %v1041_v39 = vstv %s2951_s12  ;;  %v2278_v43 = vld [vmem:[%s3326_s2 + $0x214] ss:$8 sps:$4 sm:$0xff]   ;;  %v1038_v45 = vmul.f32 %v2643_v17, %v1037_v53  ;;  %v2275_v17 = vld [vmem:[%s3326_s2 + $0x2a4] ss:$8 sps:$4 sm:$0xff]  }
  0x60   :  { %962 = vmatprep.subr.bf16.mxu0 %v2254_v50  ;;  %v853_v20 = vadd.f32 %v852_v5, %v849_v8  ;;  %v1019_v24 = vadd.f32 %v1018_v11, %v1015_v16  ;;  %v1192_v32 = vstv %s2959_s25  ;;  %s3008_s23 = sld [smem:[#allocation2 + $0x286]]  ;;  %v3071_v5 = vld [vmem:[%s3325_s1 + $0x20] sm:$0xff]  ;;  %v3088_v11 = vld [vmem:[%s3325_s1 + $0x28] sm:$0xff]  ;;  %v2288_v53 = vld [vmem:[%s3326_s2 + $0x370] ss:$8 sps:$4 sm:$0xff]  }
  0x61   :  { %s3015_s28 = sld [smem:[#allocation2 + $0x306]]  ;;  %v1045_v54 = vstv %s2975_s17 }
  0x62   :  { %783 = vmatpush1.bf16.msra.mxu1 %v2237_v36  ;;  %v1023_v30 = vadd.f32 %v1022_v18, %v1019_v24  ;;  %v2269_v36 = vld [vmem:[%s3326_s2 + $0x2b4] ss:$8 sps:$4 sm:$0xff]   ;;  %v857_v37 = vadd.f32 %v856_v22, %v853_v20  ;;  %v1195_v46 = vstv %s2982_s26  ;;  %s3033_s13 = sld [smem:[#allocation2 + $0x386]]  ;;  %v1046_v4 = vmul.f32 %v2661_v27, %v1045_v54  ;;  %v2282_v27 = vld [vmem:[%s3326_s2 + $0x200] ss:$8 sps:$4 sm:$0xff]  }
  0x63   :  { %1148 = vmatprep.subr.bf16.mxu1 %v2245_v42  ;;  %963 = vmatpush1.bf16.msra.mxu0 %v2252_v63  ;;  %v1193_v42 = vmul.f32 %v1192_v32, %v2535_v33  ;;  %v1042_v33 = vmul.f32 %v2653_v21, %v1041_v39  ;;  %v1199_v50 = vstv %s2988_s10  ;;  %v3042_v21 = vld [vmem:[%s3325_s1 + $0x10] sm:$0xff]  ;;  %s3056_s17 = sld [smem:[#allocation2 + $0x406]]  ;;  %v2284_v63 = vld [vmem:[%s3326_s2 + $0x204] ss:$8 sps:$4 sm:$0xff]  }
  0x64   :  { %964 = vmatprep.subr.bf16.mxu0 %v2260_v35  ;;  %v1027_v40 = vadd.f32 %v1026_v25, %v1023_v30  ;;  %v858_v52 = vmul.f32 0.2, %v857_v37  ;;  %v1200_v55 = vmul.f32 %v3042_v21, %v1199_v50  ;;  %v1203_v56 = vstv %s2991_s6  ;;  %s3062_s19 = sld [smem:[#allocation2 + $0x486]]  ;;  %v2279_v20 = vld [vmem:[%s3326_s2 + $0x290] ss:$8 sps:$4 sm:$0xff]  }
  0x65   :  { %801 = vmatmul.mubr.bf16.vlgmr.msra.gmra.mxu1 %v670_v48  ;;  %v3029_v48 = vld [vmem:[%s3325_s1 + $0x8] sm:$0xff]  ;;  %v1207_v62 = vstv %s3002_s11  ;;  %s3074_s27 = sld [smem:[#allocation2 + $0x7]] }
  0x66   :  { %1149 = vmatpush1.bf16.msra.mxu1 %v2243_v49  ;;  %1180 = vmatprep.mubr.bf16.mxu1 %v2385_v2  ;;  %v1031_v6 = vadd.f32 %v1030_v31, %v1027_v40  ;;  %v1196_v49 = vmul.f32 %v3029_v48, %v1195_v46  ;;  %v1211_v0 = vstv %s3008_s23  ;;  %v1208_v7 = vmul.f32 %v3071_v5, %v1207_v62  ;;  %s3080_s25 = sld [smem:[#allocation2 + $0x87]]  ;;  %v2287_v24 = vld [vmem:[%s3326_s2 + $0x284] ss:$8 sps:$4 sm:$0xff]  }
  0x67   :  { %1150 = vmatprep.subr.bf16.mxu1 %v2251_v60  ;;  %965 = vmatpush1.bf16.msra.mxu0 %v2258_v13  ;;  %v3052_v60 = vld [vmem:[%s3325_s1 + $0x18] sm:$0xff]  ;;  %v1215_v8 = vstv %s3015_s28  ;;  %s3091_s30 = sld [smem:[#allocation2 + $0x107]]  ;;  %v859_v13 = vmax.f32 %v857_v37, %v858_v52  ;;  %v2296_v40 = vld [vmem:[%s3326_s2 + $0x364] ss:$8 sps:$4 sm:$0xff]  }
  0x68   :  { %966 = vmatprep.subr.bf16.mxu0 %v2266_v44  ;;  %v1035_v58 = vadd.f32 %v1034_v41, %v1031_v6  ;;  %v1197_v59 = vadd.f32 %v1196_v49, %v1193_v42  ;;  %v1204_v61 = vmul.f32 %v3052_v60, %v1203_v56  ;;  %s3093_s28 = sld [smem:[#allocation2 + $0x187]]  ;;  %v3098_v44 = vld [vmem:[%s3325_s1 + $0x30] sm:$0xff]  ;;  %v1219_v18 = vstv %s3033_s13 }
  0x69   :  { %v1216_v16 = vmul.f32 %v3098_v44, %v1215_v8  ;;  %s3102_s8 = sld [smem:[#allocation2 + $0x207]]  ;;  %v860_v25 = vpack.c.bf16 %v859_v13, %v859_v13  ;;  %v2302_v56 = vld [vmem:[%s3326_s2 + $0x354] ss:$8 sps:$4 sm:$0xff]   ;;  %v2297_v8 = vld [vmem:[%s3326_s2 + $0x3e0] ss:$8 sps:$4 sm:$0xff]  }
  0x6a   :  { %1151 = vmatpush1.bf16.msra.mxu1 %v2249_v38  ;;  %v1039_v3 = vadd.f32 %v1038_v45, %v1035_v58  ;;  %v1201_v35 = vadd.f32 %v1200_v55, %v1197_v59  ;;  %v2281_v38 = vld [vmem:[%s3326_s2 + $0x294] ss:$8 sps:$4 sm:$0xff]   ;;  %s3107_s5 = sld [smem:[#allocation2 + $0x287]]  ;;  %v1227_v52 = vstv %s3062_s19  ;;  %v2291_v58 = vld [vmem:[%s3326_s2 + $0x3f0] ss:$8 sps:$4 sm:$0xff]  }
  0x6b   :  { %1152 = vmatprep.subr.bf16.mxu1 %v2257_v12  ;;  %967 = vmatpush1.bf16.msra.mxu0 %v2264_v51  ;;  %v1212_v12 = vmul.f32 %v3088_v11, %v1211_v0  ;;  %v1382_v51 = vstv %s3074_s27  ;;  %s3113_s13 = sld [smem:[#allocation2 + $0x307]] }
  0x6c   :  { %968 = vmatprep.subr.bf16.mxu0 %v2272_v29  ;;  %v1043_v9 = vadd.f32 %v1042_v33, %v1039_v3  ;;  %v1205_v10 = vadd.f32 %v1204_v61, %v1201_v35  ;;  %v2363_v29 = vld [vmem:[%s3325_s1] sm:$0xff]  ;;  %v1385_v31 = vstv %s3080_s25  ;;  %s3128_s27 = sld [smem:[#allocation2 + $0x387]]  ;;  %v2300_v3 = vld [vmem:[%s3326_s2 + $0x350] ss:$8 sps:$4 sm:$0xff]  }
  0x6d   :  { %v1383_v30 = vmul.f32 %v2363_v29, %v1382_v51  ;;  %s3134_s0 = sld [smem:[#allocation2 + $0x506]]  ;;  %v1386_v37 = vmul.f32 %v3029_v48, %v1385_v31  ;;  %v1389_v39 = vstv %s3091_s30  ;;  %v2364_v33 = vld [vmem:[%s3325_s1 + $0x40] sm:$0xff] }
  0x6e   :  { %1153 = vmatpush1.bf16.msra.mxu1 %v2255_v15  ;;  %v1047_v14 = vadd.f32 %v1046_v4, %v1043_v9  ;;  %v1209_v15 = vadd.f32 %v1208_v7, %v1205_v10  ;;  %v1390_v41 = vmul.f32 %v3042_v21, %v1389_v39  ;;  %v1393_v42 = vstv %s3093_s28  ;;  %s3143_s25 = sld [smem:[#allocation2 + $0x407]]  ;;  %v2299_v61 = vld [vmem:[%s3326_s2 + $0x3e4] ss:$8 sps:$4 sm:$0xff]   ;;  %v2305_v10 = vld [vmem:[%s3326_s2 + $0x3d4] ss:$8 sps:$4 sm:$0xff]  }
  0x6f   :  { %1154 = vmatprep.subr.bf16.mxu1 %v2263_v19  ;;  %969 = vmatpush1.bf16.msra.mxu0 %v2270_v1  ;;  %v2290_v19 = vld [vmem:[%s3326_s2 + $0x374] ss:$8 sps:$4 sm:$0xff]   ;;  %v1387_v45 = vadd.f32 %v1386_v37, %v1383_v30  ;;  %v1394_v46 = vmul.f32 %v3052_v60, %v1393_v42  ;;  %v1397_v49 = vstv %s3102_s8  ;;  %s3157_s26 = sld [smem:[#allocation2 + $0x487]]  ;;  %v2308_v7 = vld [vmem:[%s3326_s2 + $0x344] ss:$8 sps:$4 sm:$0xff]  }
  0x70   :  { %970 = vmatprep.subr.bf16.mxu0 %v2278_v43  ;;  %v1048_v22 = vmul.f32 0.2, %v1047_v14  ;;  %v1213_v23 = vadd.f32 %v1212_v12, %v1209_v15  ;;  %v2285_v43 = vld [vmem:[%s3326_s2 + $0x280] ss:$8 sps:$4 sm:$0xff]   ;;  %v1401_v50 = vstv %s3107_s5  ;;  %s3164_s22 = sld [smem:[#allocation2 + $0x586]]  ;;  %v1398_v21 = vmul.f32 %v3071_v5, %v1397_v49  ;;  %v2366_v12 = vld [vmem:[%s3325_s1 + $0x50] sm:$0xff] }
  0x71   :  { %v1391_v54 = vadd.f32 %v1390_v41, %v1387_v45  ;;  %v1402_v60 = vmul.f32 %v3088_v11, %v1401_v50  ;;  %s3175_s19 = sld [smem:[#allocation2 + $0x507]]  ;;  %v2311_v51 = vld [vmem:[%s3326_s2 + $0x3c4] ss:$8 sps:$4 sm:$0xff]   ;;  %v2317_v37 = vld [vmem:[%s3326_s2 + $0x3b4] ss:$8 sps:$4 sm:$0xff]  }
  0x72   :  { %1155 = vmatpush1.bf16.msra.mxu1 %v2261_v28  ;;  %v1220_v28 = vmul.f32 %v3121_v26, %v1219_v18  ;;  %v1217_v32 = vadd.f32 %v1216_v16, %v1213_v23  ;;  %v1049_v1 = vmax.f32 %v1047_v14, %v1048_v22  ;;  %v2314_v18 = vld [vmem:[%s3326_s2 + $0x334] ss:$8 sps:$4 sm:$0xff]   ;;  %v2320_v30 = vld [vmem:[%s3326_s2 + $0x324] ss:$8 sps:$4 sm:$0xff]  }
  0x73   :  { %1156 = vmatprep.subr.bf16.mxu1 %v2269_v36  ;;  %971 = vmatpush1.bf16.msra.mxu0 %v2276_v57  ;;  %v1223_v36 = vstv %s3056_s17  ;;  %v1405_v57 = vstv %s3113_s13  ;;  %v1395_v59 = vadd.f32 %v1394_v46, %v1391_v54  ;;  %v1231_v4 = vstv %s3134_s0  ;;  %s3198_s0 = sld [smem:[#allocation2 + $0x587]]  ;;  %v2323_v45 = vld [vmem:[%s3326_s2 + $0x3a4] ss:$8 sps:$4 sm:$0xff]  }
  0x74   :  { %972 = vmatprep.subr.bf16.mxu0 %v2284_v63  ;;  %v1221_v6 = vadd.f32 %v1220_v28, %v1217_v32  ;;  %v1224_v48 = vmul.f32 %v2364_v33, %v1223_v36  ;;  %v1050_v55 = vpack.c.bf16 %v1049_v1, %v1049_v1  ;;  %v2365_v63 = vld [vmem:[%s3325_s1 + $0x48] sm:$0xff]  ;;  %v1406_v5 = vmul.f32 %v3098_v44, %v1405_v57  ;;  %v2312_v28 = vld [vmem:[%s3326_s2 + $0x330] ss:$8 sps:$4 sm:$0xff]   ;;  %v2329_v49 = vld [vmem:[%s3326_s2 + $0x394] ss:$8 sps:$4 sm:$0xff]  }
  0x75   :  { %v1228_v0 = vmul.f32 %v2365_v63, %v1227_v52  ;;  %v1399_v35 = vadd.f32 %v1398_v21, %v1395_v59  ;;  %v1232_v13 = vmul.f32 %v2366_v12, %v1231_v4  ;;  %v1417_v14 = vstv %s3157_s26  ;;  %v2318_v1 = vld [vmem:[%s3326_s2 + $0x320] ss:$8 sps:$4 sm:$0xff]   ;;  %v2327_v54 = vld [vmem:[%s3326_s2 + $0x390] ss:$8 sps:$4 sm:$0xff]   ;;  %v2335_v21 = vld [vmem:[%s3326_s2 + $0x384] ss:$8 sps:$4 sm:$0xff]  }
  0x76   :  { %1157 = vmatpush1.bf16.msra.mxu1 %v2267_v47  ;;  %v2293_v47 = vld [vmem:[%s3326_s2 + $0x3f4] ss:$8 sps:$4 sm:$0xff]   ;;  %v1225_v62 = vadd.f32 %v1224_v48, %v1221_v6  ;;  %v1235_v15 = vstv %s3164_s22  ;;  %v1418_v22 = vmul.f32 %v2365_v63, %v1417_v14  ;;  %v2332_v6 = vld [vmem:[%s3326_s2 + $0x304] ss:$8 sps:$4 sm:$0xff]   ;;  %v2321_v48 = vld [vmem:[%s3326_s2 + $0x3a0] ss:$8 sps:$4 sm:$0xff]  }
  0x77   :  { %1158 = vmatprep.subr.bf16.mxu1 %v2275_v17  ;;  %973 = vmatpush1.bf16.msra.mxu0 %v2282_v27  ;;  %v2294_v17 = vld [vmem:[%s3326_s2 + $0x360] ss:$8 sps:$4 sm:$0xff]   ;;  %v1403_v27 = vadd.f32 %v1402_v60, %v1399_v35  ;;  %v1421_v23 = vstv %s3175_s19  ;;  %v2336_v59 = vld [vmem:[%s3327_s3 + $0x78] sm:$0xff]  }
  0x78   :  { %1338 = vmatprep.subr.bf16.mxu0 %v2290_v19  ;;  %v1229_v11 = vadd.f32 %v1228_v0, %v1225_v62  ;;  %v2303_v19 = vld [vmem:[%s3326_s2 + $0x3d0] ss:$8 sps:$4 sm:$0xff]   ;;  %v1422_v31 = vmul.f32 %v2366_v12, %v1421_v23  ;;  %v2333_v57 = vld [vmem:[%s3326_s2 + $0x380] ss:$8 sps:$4 sm:$0xff]  }
  0x79   :  { %v1407_v44 = vadd.f32 %v1406_v5, %v1403_v27  ;;  %v1425_v36 = vstv %s3198_s0  ;;  %v2337_v60 = vld [vmem:[%s3327_s3 + $0x38] sm:$0xff]   ;;  %v2339_v62 = vld [vmem:[%s3327_s3 + $0x30] sm:$0xff]   ;;  %v2340_v63 = vld [vmem:[%s3327_s3 + $0x68] sm:$0xff]  }
  0x7a   :  { %1159 = vmatpush1.bf16.msra.mxu1 %v2273_v34  ;;  %991 = vmatmul.mubr.bf16.vlgmr.msra.gmra.mxu0 %v860_v25  ;;  %v1409_v34 = vstv %s3128_s27  ;;  %v2367_v25 = vld [vmem:[%s3325_s1 + $0x58] sm:$0xff]  ;;  %v2341_v0 = vld [vmem:[%s3327_s3 + $0x28] sm:$0xff]   ;;  %v2346_v5 = vld [vmem:[%s3327_s3 + $0x50] sm:$0xff]  }
  0x7b   :  { %1160 = vmatprep.subr.bf16.mxu1 %v2281_v38  ;;  %1339 = vmatpush1.bf16.msra.mxu0 %v2288_v53  ;;  %v1413_v38 = vstv %s3143_s25  ;;  %v1410_v9 = vmul.f32 %v3121_v26, %v1409_v34  ;;  %v1236_v26 = vmul.f32 %v2367_v25, %v1235_v15  ;;  %v2309_v53 = vld [vmem:[%s3326_s2 + $0x3c0] ss:$8 sps:$4 sm:$0xff]   ;;  %v1426_v42 = vmul.f32 %v2367_v25, %v1425_v36  ;;  %v2344_v4 = vld [vmem:[%s3327_s3 + $0x58] sm:$0xff]  }
  0x7c   :  { %1370 = vmatprep.mubr.bf16.mxu0 %v2385_v2  ;;  %1340 = vmatprep.subr.bf16.mxu0 %v2296_v40  ;;  %v1414_v16 = vmul.f32 %v2364_v33, %v1413_v38  ;;  %v2326_v40 = vld [vmem:[%s3326_s2 + $0x314] ss:$8 sps:$4 sm:$0xff]   ;;  %v2342_v34 = vld [vmem:[%s3327_s3 + $0x60] sm:$0xff]   ;;  %v2348_v38 = vld [vmem:[%s3327_s3 + $0x48] sm:$0xff]  }
  0x7d   :  { %v2345_v35 = vld [vmem:[%s3327_s3 + $0x18] sm:$0xff]   ;;  %v2350_v27 = vld [vmem:[%s3327_s3 + $0x40] sm:$0xff]  }
  0x7e   :  { %1161 = vmatpush1.bf16.msra.mxu1 %v2279_v20  ;;  %v1411_v20 = vadd.f32 %v1410_v9, %v1407_v44  ;;  %v2351_v9 = vld [vmem:[%s3327_s3] sm:$0xff]  }
  0x7f   :  { %1162 = vmatprep.subr.bf16.mxu1 %v2287_v24  ;;  %1341 = vmatpush1.bf16.msra.mxu0 %v2294_v17  ;;  %v1233_v24 = vadd.f32 %v1232_v13, %v1229_v11  ;;  %v2330_v17 = vld [vmem:[%s3326_s2 + $0x300] ss:$8 sps:$4 sm:$0xff]  }
  0x80   :  { %1342 = vmatprep.subr.bf16.mxu0 %v2302_v56  ;;  %v1415_v29 = vadd.f32 %v1414_v16, %v1411_v20 }
  0x81   :  { %v1237_v39 = vadd.f32 %v1236_v26, %v1233_v24 }
  0x82   :  { %1163 = vmatpush1.bf16.msra.mxu1 %v2285_v43  ;;  %v1419_v32 = vadd.f32 %v1418_v22, %v1415_v29  ;;  %v2315_v43 = vld [vmem:[%s3326_s2 + $0x3b0] ss:$8 sps:$4 sm:$0xff]  }
  0x83   :  { %1528 = vmatprep.subr.bf16.mxu1 %v2293_v47  ;;  %1343 = vmatpush1.bf16.msra.mxu0 %v2300_v3  ;;  %v1238_v46 = vmul.f32 0.2, %v1237_v39  ;;  %v2324_v47 = vld [vmem:[%s3326_s2 + $0x310] ss:$8 sps:$4 sm:$0xff]   ;;  %v2343_v3 = vld [vmem:[%s3327_s3 + $0x20] sm:$0xff]  }
  0x84   :  { %1344 = vmatprep.subr.bf16.mxu0 %v2308_v7  ;;  %v1423_v41 = vadd.f32 %v1422_v31, %v1419_v32  ;;  %v2347_v7 = vld [vmem:[%s3327_s3 + $0x10] sm:$0xff]  }
  0x85   :  { %1181 = vmatmul.mubr.bf16.vlgmr.msra.gmra.mxu1 %v1050_v55  ;;  %v1239_v50 = vmax.f32 %v1237_v39, %v1238_v46 }
  0x86   :  { %1529 = vmatpush1.bf16.msra.mxu1 %v2291_v58  ;;  %1560 = vmatprep.mubr.bf16.mxu1 %v2385_v2  ;;  %v2306_v2 = vld [vmem:[%s3326_s2 + $0x340] ss:$8 sps:$4 sm:$0xff]   ;;  %v1427_v33 = vadd.f32 %v1426_v42, %v1423_v41 }
  0x87   :  { %1530 = vmatprep.subr.bf16.mxu1 %v2299_v61  ;;  %1345 = vmatpush1.bf16.msra.mxu0 %v2306_v2  ;;  %v1240_v55 = vpack.c.bf16 %v1239_v50, %v1239_v50  ;;  %v2338_v61 = vld [vmem:[%s3327_s3 + $0x70] sm:$0xff]  }
  0x88   :  { %1346 = vmatprep.subr.bf16.mxu0 %v2314_v18  ;;  %v1428_v52 = vmul.f32 0.2, %v1427_v33 }
  0x8a   :  { %1531 = vmatpush1.bf16.msra.mxu1 %v2297_v8  ;;  %v1429_v56 = vmax.f32 %v1427_v33, %v1428_v52  ;;  %v2349_v8 = vld [vmem:[%s3327_s3 + $0x8] sm:$0xff]  }
  0x8b   :  { %1532 = vmatprep.subr.bf16.mxu1 %v2305_v10  ;;  %1347 = vmatpush1.bf16.msra.mxu0 %v2312_v28 }
  0x8c   :  { %1348 = vmatprep.subr.bf16.mxu0 %v2320_v30  ;;  %v1430_v58 = vpack.c.bf16 %v1429_v56, %v1429_v56 }
  0x8e   :  { %1533 = vmatpush1.bf16.msra.mxu1 %v2303_v19 }
  0x8f   :  { %1534 = vmatprep.subr.bf16.mxu1 %v2311_v51  ;;  %1349 = vmatpush1.bf16.msra.mxu0 %v2318_v1 }
  0x90   :  { %1350 = vmatprep.subr.bf16.mxu0 %v2326_v40 }
  0x92   :  { %1535 = vmatpush1.bf16.msra.mxu1 %v2309_v53 }
  0x93   :  { %1536 = vmatprep.subr.bf16.mxu1 %v2317_v37  ;;  %1351 = vmatpush1.bf16.msra.mxu0 %v2324_v47 }
  0x94   :  { %1352 = vmatprep.subr.bf16.mxu0 %v2332_v6 }
  0x96   :  { %1537 = vmatpush1.bf16.msra.mxu1 %v2315_v43 }
  0x97   :  { %1538 = vmatprep.subr.bf16.mxu1 %v2323_v45  ;;  %1353 = vmatpush1.bf16.msra.mxu0 %v2330_v17 }
  0x98   :  { %2118 = vmatprep.subr.bf16.mxu0 %v2336_v59 }
  0x9a   :  { %1539 = vmatpush1.bf16.msra.mxu1 %v2321_v48  ;;  %1371 = vmatmul.mubr.bf16.vlgmr.msra.gmra.mxu0 %v1240_v55 }
  0x9b   :  { %1540 = vmatprep.subr.bf16.mxu1 %v2329_v49  ;;  %2119 = vmatpush3.bf16.msra.mxu0 %v2337_v60 }
  0x9c   :  { %2120 = vmatprep.subr.bf16.mxu0 %v2338_v61 }
  0x9e   :  { %1541 = vmatpush1.bf16.msra.mxu1 %v2327_v54 }
  0x9f   :  { %1542 = vmatprep.subr.bf16.mxu1 %v2335_v21  ;;  %2121 = vmatpush3.bf16.msra.mxu0 %v2339_v62 }
  0xa0   :  { %2122 = vmatprep.subr.bf16.mxu0 %v2340_v63 }
  0xa2   :  { %1543 = vmatpush1.bf16.msra.mxu1 %v2333_v57 }
  0xa3   :  { %2123 = vmatpush3.bf16.msra.mxu0 %v2341_v0 }
  0xa4   :  { %2124 = vmatprep.subr.bf16.mxu0 %v2342_v34 }
  0xa5   :  { %1561 = vmatmul.mubr.bf16.vlgmr.msra.gmra.mxu1 %v1430_v58 }
  0xa7   :  { %2125 = vmatpush3.bf16.msra.mxu0 %v2343_v3 }
  0xa8   :  { %2126 = vmatprep.subr.bf16.mxu0 %v2344_v4 }
  0xab   :  { %2127 = vmatpush3.bf16.msra.mxu0 %v2345_v35 }
  0xac   :  { %2128 = vmatprep.subr.bf16.mxu0 %v2346_v5 }
  0xaf   :  { %2129 = vmatpush3.bf16.msra.mxu0 %v2347_v7 }
  0xb0   :  { %2130 = vmatprep.subr.bf16.mxu0 %v2348_v38 }
  0xb3   :  { %2131 = vmatpush3.bf16.msra.mxu0 %v2349_v8 }
  0xb4   :  { %2132 = vmatprep.subr.bf16.mxu0 %v2350_v27 }
  0xb7   :  { %2133 = vmatpush3.bf16.msra.mxu0 %v2351_v9 }
  0xfa   :  { %v303_v10 = vpop.f32.mrf.mxu0 }
  0xfc   :  { %v305_v11 = vpop.f32.mrf.mxu0 }
  0xfe   :  { %v307_v12 = vpop.f32.mrf.mxu0 }
 0x100   :  { %v308_v14 = vpop.f32.mrf.mxu0 }
 0x105   :  { %v424_v13 = vpop.f32.mrf.mxu1 }
 0x106   :  { %v425_v2 = vadd.f32 %v424_v13, %v303_v10 }
 0x107   :  { %v426_v15 = vpop.f32.mrf.mxu1 }
 0x108   :  { %v427_v44 = vadd.f32 %v426_v15, %v305_v11 }
 0x109   :  { %v428_v16 = vpop.f32.mrf.mxu1 }
 0x10b   :  { %v429_v18 = vpop.f32.mrf.mxu1 }
 0x11a   :  { %v612_v19 = vpop.f32.mrf.mxu0 }
 0x11b   :  { %v619_v39 = vadd.f32 %v612_v19, %v425_v2 }
 0x11c   :  { %v614_v20 = vpop.f32.mrf.mxu0 }
 0x11d   :  { %v620_v1 = vadd.f32 %v614_v20, %v427_v44 }
 0x11e   :  { %v616_v22 = vpop.f32.mrf.mxu0 }
 0x120   :  { %v617_v51 = vpop.f32.mrf.mxu0 }
 0x125   :  { %v802_v23 = vpop.f32.mrf.mxu1 }
 0x126   :  { %v809_v40 = vadd.f32 %v802_v23, %v619_v39 }
 0x127   :  { %v804_v24 = vpop.f32.mrf.mxu1 }
 0x128   :  { %v810_v41 = vadd.f32 %v804_v24, %v620_v1 }
 0x129   :  { %v806_v25 = vpop.f32.mrf.mxu1 }
 0x12b   :  { %v807_v26 = vpop.f32.mrf.mxu1 }
 0x13a   :  { %v992_v28 = vpop.f32.mrf.mxu0 }
 0x13b   :  { %v999_v42 = vadd.f32 %v992_v28, %v809_v40 }
 0x13c   :  { %v994_v29 = vpop.f32.mrf.mxu0 }
 0x13d   :  { %v1000_v43 = vadd.f32 %v994_v29, %v810_v41 }
 0x13e   :  { %v996_v30 = vpop.f32.mrf.mxu0 }
 0x140   :  { %v997_v53 = vpop.f32.mrf.mxu0 }
 0x145   :  { %v1182_v31 = vpop.f32.mrf.mxu1 }
 0x146   :  { %v1189_v46 = vadd.f32 %v1182_v31, %v999_v42 }
 0x147   :  { %v1184_v32 = vpop.f32.mrf.mxu1 }
 0x148   :  { %v1190_v6 = vadd.f32 %v1184_v32, %v1000_v43 }
 0x149   :  { %v1186_v36 = vpop.f32.mrf.mxu1 }
 0x14b   :  { %v1187_v37 = vpop.f32.mrf.mxu1 }
 0x15a   :  { %v1372_v45 = vpop.f32.mrf.mxu0 }
 0x15b   :  { %v1379_v33 = vadd.f32 %v1372_v45, %v1189_v46 }
 0x15c   :  { %v1374_v47 = vpop.f32.mrf.mxu0 }
 0x15d   :  { %v1380_v49 = vadd.f32 %v1374_v47, %v1190_v6 }
 0x15e   :  { %v1376_v48 = vpop.f32.mrf.mxu0 }
 0x160   :  { %v1377_v17 = vpop.f32.mrf.mxu0 }
 0x165   :  { %v1562_v50 = vpop.f32.mrf.mxu1 }
 0x166   :  { %v1569_v52 = vadd.f32 %v1562_v50, %v1379_v33 }
 0x167   :  { %v1564_v54 = vpop.f32.mrf.mxu1 }
 0x168   :  { %v1571_v21 = vmul.f32 0.2, %v1569_v52  ;;  %v1570_v55 = vadd.f32 %v1564_v54, %v1380_v49 }
 0x169   :  { %v1566_v56 = vpop.f32.mrf.mxu1 }
 0x16a   :  { %v1572_v57 = vmul.f32 0.2, %v1570_v55  ;;  %v1573_v58 = vmax.f32 %v1569_v52, %v1571_v21 }
 0x16b   :  { %v1567_v59 = vpop.f32.mrf.mxu1 }
 0x16c   :  { %v1574_v60 = vmax.f32 %v1570_v55, %v1572_v57  ;;  %v1575_v62 = vpack.c.bf16 %v1573_v58, %v1573_v58 }
 0x16e   :  { %v1576_v61 = vpack.c.bf16 %v1574_v60, %v1574_v60 }
 0x170   :  { %1737 = vmatprep.mubr.bf16.mxu0 %v1576_v61 }
 0x171   :  { %1738 = vmatmul.mubr.bf16.vlgmr.msra.gmra.mxu0 %v1575_v62 }
 0x231   :  { %v2134_v63 = vpop.f32.mrf.mxu0 }
 0x233   :  { %v2135_v0 = vpop.f32.mrf.mxu0 }
 0x234   :  { %v2136_v34 = vadd.f32 %v2135_v0, %v2134_v63 }
 0x235   :  { %v2137_v3 = vpop.f32.mrf.mxu0 }
 0x236   :  { %v1745_v4 = vsub.f32 0.0, %v2136_v34 }
 0x237   :  { %v2138_v35 = vpop.f32.mrf.mxu0 }
 0x238   :  { %v1746_v5 = vmul.f32 1.442695, %v1745_v4 }
 0x23a   :  { %2352 = vpow2.f32 %v1746_v5 }
 0x247   :  { %v2353_v7 = vpop.eup %2352 }
 0x248   :  { %v1748_v38 = vadd.f32 1.0, %v2353_v7 }
 0x24a   :  { %2354 = vrcp.f32 %v1748_v38 }
 0x257   :  { %v2355_v8 = vpop.eup %2354 }
 0x258   :  { %1750 = vst [vmem:[%s3328_s4] sm:$0xff] %v2355_v8 }
 0x259   :  { %1755 = vsyncpa [#allocation3], 1 }

</bundles_post_ra>
